<compile_context>
chip_gen: v7x
topology: tpu7x:2x2x1
jax: 0.10.0
libtpu: 0.0.40
codegen_flags: <defaults>
</compile_context>

<pallas_src>
import jax
import jax.numpy as jnp
from jax.experimental import pallas as pl
from jax.experimental.pallas import tpu as pltpu

# ------------------------- scaled-down CLIP ViT config -----------------------
IMG = 16            # stands in for the 224x224 Upsample target
PATCH = 8
GRID = IMG // PATCH
N_PATCH = GRID * GRID
SEQ = N_PATCH + 1   # + class token
WIDTH = 32          # transformer width
HEADS = 4
HEAD_DIM = WIDTH // HEADS
MLP = 4 * WIDTH
LAYERS = 2
CLIP_OUT = 16       # CLIP visual-projection output dim ("output_size")
EMBED = 24          # module embed_size (!= CLIP_OUT -> adapt_head = Linear)
LN_EPS = 1e-5
P2 = 3 * PATCH * PATCH


# ------------------------------ fused Pallas kernel ---------------------------
def _ln(x, g, b):
    """LayerNorm over the last dim, f32 statistics."""
    mu = jnp.mean(x, axis=-1, keepdims=True)
    var = jnp.mean(jnp.square(x - mu), axis=-1, keepdims=True)
    return (x - mu) * jax.lax.rsqrt(var + LN_EPS) * g + b


def _mm(x_f32, w_bf16):
    """Single 2-D MXU matmul: (M,K) f32 @ (K,N) bf16 -> (M,N) f32."""
    return jnp.dot(x_f32.astype(jnp.bfloat16), w_bf16,
                   preferred_element_type=jnp.float32)


def _clip_encoder_kernel(
    patches_ref, w_patch_ref, pos_ref, ln_pre_g_ref, ln_pre_b_ref,
    ln1_g_ref, ln1_b_ref, w_qkv_ref, b_qkv_ref, wo_ref, bo_ref,
    ln2_g_ref, ln2_b_ref, w_fc_ref, b_fc_ref, w_pj_ref, b_pj_ref,
    ln_post_g_ref, ln_post_b_ref, vis_w_ref, adapt_w_ref, adapt_b_ref,
    out_ref,
):
    f32 = jnp.float32
    bf16 = jnp.bfloat16
    scale = 1.0 / (HEAD_DIM ** 0.5)

    # --- patch embedding (conv-as-matmul, bias-free); row 0 of `patches` is a
    #     zero patch so the class-token slot gets 0 from the matmul, and the
    #     class embedding arrives folded into pos[0]. Patches are already bf16.
    h = jnp.dot(patches_ref[0], w_patch_ref[...],
                preferred_element_type=f32)            # (SEQ, WIDTH) f32
    h = h + pos_ref[...]
    h = _ln(h, ln_pre_g_ref[...], ln_pre_b_ref[...])

    # --- residual attention blocks (unrolled; fine for LAYERS=2 — move to a
    #     grid axis / fori_loop if LAYERS is ever scaled up) ---
    for l in range(LAYERS):
        # attention
        x = _ln(h, ln1_g_ref[l], ln1_b_ref[l])
        qkv = _mm(x, w_qkv_ref[l]) + b_qkv_ref[l]      # fused QKV: (SEQ, 3*WIDTH)
        q = qkv[:, 0 * WIDTH:1 * WIDTH] * scale        # fold 1/sqrt(d) into q
        k = qkv[:, 1 * WIDTH:2 * WIDTH]
        v = qkv[:, 2 * WIDTH:3 * WIDTH]

        # fold heads into a leading batch dim (lane slices only, no sublane
        # transposes), then two head-batched einsums + ONE softmax for all heads
        qh = jnp.stack([q[:, i * HEAD_DIM:(i + 1) * HEAD_DIM]
                        for i in range(HEADS)], axis=0)        # (H, SEQ, D)
        kh = jnp.stack([k[:, i * HEAD_DIM:(i + 1) * HEAD_DIM]
                        for i in range(HEADS)], axis=0)
        vh = jnp.stack([v[:, i * HEAD_DIM:(i + 1) * HEAD_DIM]
                        for i in range(HEADS)], axis=0)
        s = jnp.einsum('hqd,hkd->hqk', qh.astype(bf16), kh.astype(bf16),
                       preferred_element_type=f32)             # (H, SEQ, SEQ)
        s = s - jnp.max(s, axis=-1, keepdims=True)
        p = jnp.exp(s)
        p = p * pl.reciprocal(jnp.sum(p, axis=-1, keepdims=True), approx=True)
        o = jnp.einsum('hqk,hkd->hqd', p.astype(bf16), vh.astype(bf16),
                       preferred_element_type=f32)             # (H, SEQ, D)
        o = jnp.concatenate([o[i] for i in range(HEADS)], axis=-1)  # (SEQ, WIDTH)

        # single out-projection with K=WIDTH (head concat fused above)
        h = h + _mm(o, wo_ref[l]) + bo_ref[l]

        # MLP
        x = _ln(h, ln2_g_ref[l], ln2_b_ref[l])
        m = _mm(x, w_fc_ref[l]) + b_fc_ref[l]          # (SEQ, 4*WIDTH), lane-dense 128
        m = m * jax.nn.sigmoid(1.702 * m)              # QuickGELU (f32)
        h = h + _mm(m, w_pj_ref[l]) + b_pj_ref[l]      # fused residual

    # --- epilogue on the CLS row only: ln_post, visual projection, adapt_head ---
    cls = _ln(h[0:1, :], ln_post_g_ref[...], ln_post_b_ref[...])   # (1, WIDTH)
    emb = _mm(cls, vis_w_ref[...])                                 # (1, CLIP_OUT)
    emb = _mm(emb, adapt_w_ref[...]) + adapt_b_ref[...]            # (1, EMBED)
    out_ref[0] = emb.astype(out_ref.dtype)


# ------------------------------ parameter init --------------------------------
def init_params(key):
    keys = iter(jax.random.split(key, 64))
    f32, bf16 = jnp.float32, jnp.bfloat16

    def nrm(shape, scale=0.02, dtype=f32):
        return (scale * jax.random.normal(next(keys), shape)).astype(dtype)

    return {
        # patch embedding Conv2d(3, WIDTH, PATCH, stride=PATCH, bias=False)
        "conv_w": nrm((WIDTH, 3, PATCH, PATCH)),
        "class_emb": nrm((WIDTH,)),
        "pos_emb": nrm((SEQ, WIDTH)),
        "ln_pre_g": jnp.ones((1, WIDTH), f32), "ln_pre_b": jnp.zeros((1, WIDTH), f32),
        "ln_post_g": jnp.ones((1, WIDTH), f32), "ln_post_b": jnp.zeros((1, WIDTH), f32),
        "vis_proj": nrm((WIDTH, CLIP_OUT), dtype=bf16),        # no bias in CLIP proj
        "adapt_w": nrm((CLIP_OUT, EMBED), dtype=bf16),         # adapt_head Linear
        "adapt_b": nrm((1, EMBED)),
        # stacked per-layer transformer weights (QKV fused)
        "ln1_g": jnp.ones((LAYERS, 1, WIDTH), f32), "ln1_b": jnp.zeros((LAYERS, 1, WIDTH), f32),
        "w_qkv": nrm((LAYERS, WIDTH, 3 * WIDTH), dtype=bf16),
        "b_qkv": jnp.zeros((LAYERS, 1, 3 * WIDTH), f32),
        "wo": nrm((LAYERS, WIDTH, WIDTH), dtype=bf16),
        "bo": jnp.zeros((LAYERS, 1, WIDTH), f32),
        "ln2_g": jnp.ones((LAYERS, 1, WIDTH), f32), "ln2_b": jnp.zeros((LAYERS, 1, WIDTH), f32),
        "w_fc": nrm((LAYERS, WIDTH, MLP), dtype=bf16),
        "b_fc": jnp.zeros((LAYERS, 1, MLP), f32),
        "w_pj": nrm((LAYERS, MLP, WIDTH), dtype=bf16),
        "b_pj": jnp.zeros((LAYERS, 1, WIDTH), f32),
    }


# ------------------------------ forward pass ----------------------------------
def nearest_upsample(img, size):
    # JAX glue (not the hot path): nn.Upsample(size=(S, S), mode='nearest')
    # out index i -> in index floor(i * in/out), per torch 'nearest' semantics.
    _, _, H, W = img.shape
    rows = jnp.floor(jnp.arange(size) * (H / size)).astype(jnp.int32)
    cols = jnp.floor(jnp.arange(size) * (W / size)).astype(jnp.int32)
    return img[:, :, rows][:, :, :, cols]


def clip_based_encoder(params, image):
    """image: (B, 3, H, W) float32  ->  (B, EMBED, 1) float32."""
    B = image.shape[0]
    x = nearest_upsample(image, IMG)                               # (B, 3, IMG, IMG)

    # conv-as-matmul patch flattening (layout plumbing, plain XLA)
    patches = x.reshape(B, 3, GRID, PATCH, GRID, PATCH)
    patches = patches.transpose(0, 2, 4, 1, 3, 5).reshape(B, N_PATCH, P2)
    # prepend a zero "patch" for the class-token slot, then cast to bf16
    # (halves the biggest input DMA; the MXU consumes bf16 anyway)
    patches = jnp.concatenate([jnp.zeros((B, 1, P2), jnp.float32), patches], axis=1)
    patches = patches.astype(jnp.bfloat16)

    w_patch = params["conv_w"].reshape(WIDTH, P2).T.astype(jnp.bfloat16)
    pos = params["pos_emb"].at[0].add(params["class_emb"])        # class emb folded into pos[0]

    weight_args = (
        w_patch, pos,
        params["ln_pre_g"], params["ln_pre_b"],
        params["ln1_g"], params["ln1_b"], params["w_qkv"], params["b_qkv"],
        params["wo"], params["bo"],
        params["ln2_g"], params["ln2_b"], params["w_fc"], params["b_fc"],
        params["w_pj"], params["b_pj"],
        params["ln_post_g"], params["ln_post_b"],
        params["vis_proj"], params["adapt_w"], params["adapt_b"],
    )

    def const_spec(shape):
        zeros = (0,) * len(shape)
        # full-array block, constant index -> loaded once, VMEM-resident
        return pl.BlockSpec(shape, lambda b, _z=zeros: _z)

    in_specs = [pl.BlockSpec((1, SEQ, P2), lambda b: (b, 0, 0))]
    in_specs += [const_spec(w.shape) for w in weight_args]

    out = pl.pallas_call(
        _clip_encoder_kernel,
        out_shape=jax.ShapeDtypeStruct((B, 1, EMBED), jnp.float32),
        grid=(B,),
        in_specs=in_specs,
        out_specs=pl.BlockSpec((1, 1, EMBED), lambda b: (b, 0, 0)),
        compiler_params=pltpu.CompilerParams(
            dimension_semantics=("parallel",)),   # shard samples across TCs (v7x)
    )(patches, *weight_args)

    return jnp.transpose(out, (0, 2, 1))                           # (B, EMBED, 1)


# ----------------------------------- main --------------------------------------
if __name__ == "__main__":
    key = jax.random.PRNGKey(0)
    pkey, xkey = jax.random.split(key)
    params = init_params(pkey)

    # small input (not already IMGxIMG) so the nearest Upsample actually resizes
    image = jax.random.normal(xkey, (2, 3, 12, 12), dtype=jnp.float32)

    out = jax.jit(clip_based_encoder)(params, image)
    out = jax.block_until_ready(out)

    assert out.shape == (2, EMBED, 1), out.shape
    assert out.dtype == jnp.float32
    assert bool(jnp.all(jnp.isfinite(out)))
    print("KERNEL_OK")
</pallas_src>

<mosaic_0001>
module attributes {stable_mosaic.version = 11 : i64} {
  func.func @_clip_encoder_kernel(%arg0: i32, %arg1: memref<1x5x192xbf16, #tpu.memory_space<vmem>>, %arg2: memref<192x32xbf16, #tpu.memory_space<vmem>>, %arg3: memref<5x32xf32, #tpu.memory_space<vmem>>, %arg4: memref<1x32xf32, #tpu.memory_space<vmem>>, %arg5: memref<1x32xf32, #tpu.memory_space<vmem>>, %arg6: memref<2x1x32xf32, #tpu.memory_space<vmem>>, %arg7: memref<2x1x32xf32, #tpu.memory_space<vmem>>, %arg8: memref<2x32x96xbf16, #tpu.memory_space<vmem>>, %arg9: memref<2x1x96xf32, #tpu.memory_space<vmem>>, %arg10: memref<2x32x32xbf16, #tpu.memory_space<vmem>>, %arg11: memref<2x1x32xf32, #tpu.memory_space<vmem>>, %arg12: memref<2x1x32xf32, #tpu.memory_space<vmem>>, %arg13: memref<2x1x32xf32, #tpu.memory_space<vmem>>, %arg14: memref<2x32x128xbf16, #tpu.memory_space<vmem>>, %arg15: memref<2x1x128xf32, #tpu.memory_space<vmem>>, %arg16: memref<2x128x32xbf16, #tpu.memory_space<vmem>>, %arg17: memref<2x1x32xf32, #tpu.memory_space<vmem>>, %arg18: memref<1x32xf32, #tpu.memory_space<vmem>>, %arg19: memref<1x32xf32, #tpu.memory_space<vmem>>, %arg20: memref<32x16xbf16, #tpu.memory_space<vmem>>, %arg21: memref<16x24xbf16, #tpu.memory_space<vmem>>, %arg22: memref<1x24xf32, #tpu.memory_space<vmem>>, %arg23: memref<1x1x24xf32, #tpu.memory_space<vmem>>) attributes {dimension_semantics = [#tpu.dimension_semantics<parallel>], iteration_bounds = array<i64: 2>, scalar_prefetch = 0 : i64, scratch_operands = 0 : i64, tpu.core_type = #tpu.core_type<tc>, window_params = [{transform_indices = @transform_0, window_bounds = array<i64: 1, 5, 192>}, {pipeline_mode = #tpu.pipeline_mode<synchronous>, transform_indices = @transform_1, window_bounds = array<i64: 192, 32>}, {pipeline_mode = #tpu.pipeline_mode<synchronous>, transform_indices = @transform_2, window_bounds = array<i64: 5, 32>}, {pipeline_mode = #tpu.pipeline_mode<synchronous>, transform_indices = @transform_3, window_bounds = array<i64: 1, 32>}, {pipeline_mode = #tpu.pipeline_mode<synchronous>, transform_indices = @transform_4, window_bounds = array<i64: 1, 32>}, {pipeline_mode = #tpu.pipeline_mode<synchronous>, transform_indices = @transform_5, window_bounds = array<i64: 2, 1, 32>}, {pipeline_mode = #tpu.pipeline_mode<synchronous>, transform_indices = @transform_6, window_bounds = array<i64: 2, 1, 32>}, {pipeline_mode = #tpu.pipeline_mode<synchronous>, transform_indices = @transform_7, window_bounds = array<i64: 2, 32, 96>}, {pipeline_mode = #tpu.pipeline_mode<synchronous>, transform_indices = @transform_8, window_bounds = array<i64: 2, 1, 96>}, {pipeline_mode = #tpu.pipeline_mode<synchronous>, transform_indices = @transform_9, window_bounds = array<i64: 2, 32, 32>}, {pipeline_mode = #tpu.pipeline_mode<synchronous>, transform_indices = @transform_10, window_bounds = array<i64: 2, 1, 32>}, {pipeline_mode = #tpu.pipeline_mode<synchronous>, transform_indices = @transform_11, window_bounds = array<i64: 2, 1, 32>}, {pipeline_mode = #tpu.pipeline_mode<synchronous>, transform_indices = @transform_12, window_bounds = array<i64: 2, 1, 32>}, {pipeline_mode = #tpu.pipeline_mode<synchronous>, transform_indices = @transform_13, window_bounds = array<i64: 2, 32, 128>}, {pipeline_mode = #tpu.pipeline_mode<synchronous>, transform_indices = @transform_14, window_bounds = array<i64: 2, 1, 128>}, {pipeline_mode = #tpu.pipeline_mode<synchronous>, transform_indices = @transform_15, window_bounds = array<i64: 2, 128, 32>}, {pipeline_mode = #tpu.pipeline_mode<synchronous>, transform_indices = @transform_16, window_bounds = array<i64: 2, 1, 32>}, {pipeline_mode = #tpu.pipeline_mode<synchronous>, transform_indices = @transform_17, window_bounds = array<i64: 1, 32>}, {pipeline_mode = #tpu.pipeline_mode<synchronous>, transform_indices = @transform_18, window_bounds = array<i64: 1, 32>}, {pipeline_mode = #tpu.pipeline_mode<synchronous>, transform_indices = @transform_19, window_bounds = array<i64: 32, 16>}, {pipeline_mode = #tpu.pipeline_mode<synchronous>, transform_indices = @transform_20, window_bounds = array<i64: 16, 24>}, {pipeline_mode = #tpu.pipeline_mode<synchronous>, transform_indices = @transform_21, window_bounds = array<i64: 1, 24>}, {transform_indices = @transform_22, window_bounds = array<i64: 1, 1, 24>}]} {
    %c0 = arith.constant 0 : index
    %c0_0 = arith.constant 0 : index
    %c0_1 = arith.constant 0 : index
    %0 = vector.load %arg1[%c0, %c0_0, %c0_1] : memref<1x5x192xbf16, #tpu.memory_space<vmem>>, vector<1x5x192xbf16>
    %1 = vector.shape_cast %0 : vector<1x5x192xbf16> to vector<5x192xbf16>
    %c0_2 = arith.constant 0 : index
    %c0_3 = arith.constant 0 : index
    %2 = vector.load %arg2[%c0_2, %c0_3] : memref<192x32xbf16, #tpu.memory_space<vmem>>, vector<192x32xbf16>
    %cst = arith.constant dense<0.000000e+00> : vector<5x32xf32>
    %3 = tpu.matmul %1, %2, %cst {dimension_numbers = #tpu.dot_dimension_numbers<[1], [0], [0], [1], [0, 0, 1, 1], [], []>} : vector<5x192xbf16>, vector<192x32xbf16>, vector<5x32xf32> -> vector<5x32xf32>
    %c0_4 = arith.constant 0 : index
    %c0_5 = arith.constant 0 : index
    %4 = vector.load %arg3[%c0_4, %c0_5] : memref<5x32xf32, #tpu.memory_space<vmem>>, vector<5x32xf32>
    %5 = arith.addf %3, %4 : vector<5x32xf32>
    %c0_6 = arith.constant 0 : index
    %c0_7 = arith.constant 0 : index
    %6 = vector.load %arg4[%c0_6, %c0_7] : memref<1x32xf32, #tpu.memory_space<vmem>>, vector<1x32xf32>
    %c0_8 = arith.constant 0 : index
    %c0_9 = arith.constant 0 : index
    %7 = vector.load %arg5[%c0_8, %c0_9] : memref<1x32xf32, #tpu.memory_space<vmem>>, vector<1x32xf32>
    %cst_10 = arith.constant dense<0.000000e+00> : vector<5xf32>
    %8 = vector.multi_reduction <add>, %5, %cst_10 [1] : vector<5x32xf32> to vector<5xf32>
    %9 = vector.shape_cast %8 : vector<5xf32> to vector<5x1xf32>
    %cst_11 = arith.constant 3.200000e+01 : f32
    %10 = vector.broadcast %cst_11 : f32 to vector<5x1xf32>
    %11 = arith.divf %9, %10 : vector<5x1xf32>
    %12 = vector.broadcast %11 : vector<5x1xf32> to vector<5x32xf32>
    %13 = arith.subf %5, %12 : vector<5x32xf32>
    %14 = arith.mulf %13, %13 : vector<5x32xf32>
    %cst_12 = arith.constant dense<0.000000e+00> : vector<5xf32>
    %15 = vector.multi_reduction <add>, %14, %cst_12 [1] : vector<5x32xf32> to vector<5xf32>
    %16 = vector.shape_cast %15 : vector<5xf32> to vector<5x1xf32>
    %cst_13 = arith.constant 3.200000e+01 : f32
    %17 = vector.broadcast %cst_13 : f32 to vector<5x1xf32>
    %18 = arith.divf %16, %17 : vector<5x1xf32>
    %19 = vector.broadcast %11 : vector<5x1xf32> to vector<5x32xf32>
    %20 = arith.subf %5, %19 : vector<5x32xf32>
    %cst_14 = arith.constant 9.99999974E-6 : f32
    %21 = vector.broadcast %cst_14 : f32 to vector<5x1xf32>
    %22 = arith.addf %18, %21 : vector<5x1xf32>
    %23 = math.rsqrt %22 : vector<5x1xf32>
    %24 = vector.broadcast %23 : vector<5x1xf32> to vector<5x32xf32>
    %25 = arith.mulf %20, %24 : vector<5x32xf32>
    %26 = vector.broadcast %6 : vector<1x32xf32> to vector<5x32xf32>
    %27 = arith.mulf %25, %26 : vector<5x32xf32>
    %28 = vector.broadcast %7 : vector<1x32xf32> to vector<5x32xf32>
    %29 = arith.addf %27, %28 : vector<5x32xf32>
    %c0_15 = arith.constant 0 : index
    %c0_16 = arith.constant 0 : index
    %c0_17 = arith.constant 0 : index
    %30 = vector.load %arg6[%c0_15, %c0_16, %c0_17] : memref<2x1x32xf32, #tpu.memory_space<vmem>>, vector<1x1x32xf32>
    %31 = vector.shape_cast %30 : vector<1x1x32xf32> to vector<1x32xf32>
    %c0_18 = arith.constant 0 : index
    %c0_19 = arith.constant 0 : index
    %c0_20 = arith.constant 0 : index
    %32 = vector.load %arg7[%c0_18, %c0_19, %c0_20] : memref<2x1x32xf32, #tpu.memory_space<vmem>>, vector<1x1x32xf32>
    %33 = vector.shape_cast %32 : vector<1x1x32xf32> to vector<1x32xf32>
    %cst_21 = arith.constant dense<0.000000e+00> : vector<5xf32>
    %34 = vector.multi_reduction <add>, %29, %cst_21 [1] : vector<5x32xf32> to vector<5xf32>
    %35 = vector.shape_cast %34 : vector<5xf32> to vector<5x1xf32>
    %cst_22 = arith.constant 3.200000e+01 : f32
    %36 = vector.broadcast %cst_22 : f32 to vector<5x1xf32>
    %37 = arith.divf %35, %36 : vector<5x1xf32>
    %38 = vector.broadcast %37 : vector<5x1xf32> to vector<5x32xf32>
    %39 = arith.subf %29, %38 : vector<5x32xf32>
    %40 = arith.mulf %39, %39 : vector<5x32xf32>
    %cst_23 = arith.constant dense<0.000000e+00> : vector<5xf32>
    %41 = vector.multi_reduction <add>, %40, %cst_23 [1] : vector<5x32xf32> to vector<5xf32>
    %42 = vector.shape_cast %41 : vector<5xf32> to vector<5x1xf32>
    %cst_24 = arith.constant 3.200000e+01 : f32
    %43 = vector.broadcast %cst_24 : f32 to vector<5x1xf32>
    %44 = arith.divf %42, %43 : vector<5x1xf32>
    %45 = vector.broadcast %37 : vector<5x1xf32> to vector<5x32xf32>
    %46 = arith.subf %29, %45 : vector<5x32xf32>
    %cst_25 = arith.constant 9.99999974E-6 : f32
    %47 = vector.broadcast %cst_25 : f32 to vector<5x1xf32>
    %48 = arith.addf %44, %47 : vector<5x1xf32>
    %49 = math.rsqrt %48 : vector<5x1xf32>
    %50 = vector.broadcast %49 : vector<5x1xf32> to vector<5x32xf32>
    %51 = arith.mulf %46, %50 : vector<5x32xf32>
    %52 = vector.broadcast %31 : vector<1x32xf32> to vector<5x32xf32>
    %53 = arith.mulf %51, %52 : vector<5x32xf32>
    %54 = vector.broadcast %33 : vector<1x32xf32> to vector<5x32xf32>
    %55 = arith.addf %53, %54 : vector<5x32xf32>
    %c0_26 = arith.constant 0 : index
    %c0_27 = arith.constant 0 : index
    %c0_28 = arith.constant 0 : index
    %56 = vector.load %arg8[%c0_26, %c0_27, %c0_28] : memref<2x32x96xbf16, #tpu.memory_space<vmem>>, vector<1x32x96xbf16>
    %57 = vector.shape_cast %56 : vector<1x32x96xbf16> to vector<32x96xbf16>
    %58 = arith.truncf %55 : vector<5x32xf32> to vector<5x32xbf16>
    %cst_29 = arith.constant dense<0.000000e+00> : vector<5x96xf32>
    %59 = tpu.matmul %58, %57, %cst_29 {dimension_numbers = #tpu.dot_dimension_numbers<[1], [0], [0], [1], [0, 0, 1, 1], [], []>} : vector<5x32xbf16>, vector<32x96xbf16>, vector<5x96xf32> -> vector<5x96xf32>
    %c0_30 = arith.constant 0 : index
    %c0_31 = arith.constant 0 : index
    %c0_32 = arith.constant 0 : index
    %60 = vector.load %arg9[%c0_30, %c0_31, %c0_32] : memref<2x1x96xf32, #tpu.memory_space<vmem>>, vector<1x1x96xf32>
    %61 = vector.shape_cast %60 : vector<1x1x96xf32> to vector<1x96xf32>
    %62 = vector.broadcast %61 : vector<1x96xf32> to vector<5x96xf32>
    %63 = arith.addf %59, %62 : vector<5x96xf32>
    %64 = vector.extract_strided_slice %63 {offsets = [0, 0], sizes = [5, 32], strides = [1, 1]} : vector<5x96xf32> to vector<5x32xf32>
    %cst_33 = arith.constant 0.353553385 : f32
    %65 = vector.broadcast %cst_33 : f32 to vector<5x32xf32>
    %66 = arith.mulf %64, %65 : vector<5x32xf32>
    %67 = vector.extract_strided_slice %63 {offsets = [0, 32], sizes = [5, 32], strides = [1, 1]} : vector<5x96xf32> to vector<5x32xf32>
    %68 = vector.extract_strided_slice %63 {offsets = [0, 64], sizes = [5, 32], strides = [1, 1]} : vector<5x96xf32> to vector<5x32xf32>
    %69 = vector.extract_strided_slice %66 {offsets = [0, 0], sizes = [5, 8], strides = [1, 1]} : vector<5x32xf32> to vector<5x8xf32>
    %70 = vector.extract_strided_slice %66 {offsets = [0, 8], sizes = [5, 8], strides = [1, 1]} : vector<5x32xf32> to vector<5x8xf32>
    %71 = vector.extract_strided_slice %66 {offsets = [0, 16], sizes = [5, 8], strides = [1, 1]} : vector<5x32xf32> to vector<5x8xf32>
    %72 = vector.extract_strided_slice %66 {offsets = [0, 24], sizes = [5, 8], strides = [1, 1]} : vector<5x32xf32> to vector<5x8xf32>
    %73 = vector.shape_cast %69 : vector<5x8xf32> to vector<1x5x8xf32>
    %74 = vector.shape_cast %70 : vector<5x8xf32> to vector<1x5x8xf32>
    %75 = vector.shape_cast %71 : vector<5x8xf32> to vector<1x5x8xf32>
    %76 = vector.shape_cast %72 : vector<5x8xf32> to vector<1x5x8xf32>
    %77 = tpu.concatenate %73, %74, %75, %76 in 0 : vector<1x5x8xf32>, vector<1x5x8xf32>, vector<1x5x8xf32>, vector<1x5x8xf32> -> vector<4x5x8xf32>
    %78 = vector.extract_strided_slice %67 {offsets = [0, 0], sizes = [5, 8], strides = [1, 1]} : vector<5x32xf32> to vector<5x8xf32>
    %79 = vector.extract_strided_slice %67 {offsets = [0, 8], sizes = [5, 8], strides = [1, 1]} : vector<5x32xf32> to vector<5x8xf32>
    %80 = vector.extract_strided_slice %67 {offsets = [0, 16], sizes = [5, 8], strides = [1, 1]} : vector<5x32xf32> to vector<5x8xf32>
    %81 = vector.extract_strided_slice %67 {offsets = [0, 24], sizes = [5, 8], strides = [1, 1]} : vector<5x32xf32> to vector<5x8xf32>
    %82 = vector.shape_cast %78 : vector<5x8xf32> to vector<1x5x8xf32>
    %83 = vector.shape_cast %79 : vector<5x8xf32> to vector<1x5x8xf32>
    %84 = vector.shape_cast %80 : vector<5x8xf32> to vector<1x5x8xf32>
    %85 = vector.shape_cast %81 : vector<5x8xf32> to vector<1x5x8xf32>
    %86 = tpu.concatenate %82, %83, %84, %85 in 0 : vector<1x5x8xf32>, vector<1x5x8xf32>, vector<1x5x8xf32>, vector<1x5x8xf32> -> vector<4x5x8xf32>
    %87 = vector.extract_strided_slice %68 {offsets = [0, 0], sizes = [5, 8], strides = [1, 1]} : vector<5x32xf32> to vector<5x8xf32>
    %88 = vector.extract_strided_slice %68 {offsets = [0, 8], sizes = [5, 8], strides = [1, 1]} : vector<5x32xf32> to vector<5x8xf32>
    %89 = vector.extract_strided_slice %68 {offsets = [0, 16], sizes = [5, 8], strides = [1, 1]} : vector<5x32xf32> to vector<5x8xf32>
    %90 = vector.extract_strided_slice %68 {offsets = [0, 24], sizes = [5, 8], strides = [1, 1]} : vector<5x32xf32> to vector<5x8xf32>
    %91 = vector.shape_cast %87 : vector<5x8xf32> to vector<1x5x8xf32>
    %92 = vector.shape_cast %88 : vector<5x8xf32> to vector<1x5x8xf32>
    %93 = vector.shape_cast %89 : vector<5x8xf32> to vector<1x5x8xf32>
    %94 = vector.shape_cast %90 : vector<5x8xf32> to vector<1x5x8xf32>
    %95 = tpu.concatenate %91, %92, %93, %94 in 0 : vector<1x5x8xf32>, vector<1x5x8xf32>, vector<1x5x8xf32>, vector<1x5x8xf32> -> vector<4x5x8xf32>
    %96 = arith.truncf %77 : vector<4x5x8xf32> to vector<4x5x8xbf16>
    %97 = arith.truncf %86 : vector<4x5x8xf32> to vector<4x5x8xbf16>
    "tpu.trace_start"() <{level = 10 : i32, message = "hqd,hkd->hqk"}> : () -> ()
    %cst_34 = arith.constant dense<0.000000e+00> : vector<4x5x5xf32>
    %98 = tpu.matmul %96, %97, %cst_34 {dimension_numbers = #tpu.dot_dimension_numbers<[2], [2], [1], [1], [0, 0, 0, 1, 1, 1], [0], [0]>} : vector<4x5x8xbf16>, vector<4x5x8xbf16>, vector<4x5x5xf32> -> vector<4x5x5xf32>
    "tpu.trace_stop"() : () -> ()
    %cst_35 = arith.constant dense<0xFF800000> : vector<4x5xf32>
    %99 = vector.multi_reduction <maximumf>, %98, %cst_35 [2] : vector<4x5x5xf32> to vector<4x5xf32>
    %100 = vector.shape_cast %99 : vector<4x5xf32> to vector<4x5x1xf32>
    %101 = vector.broadcast %100 : vector<4x5x1xf32> to vector<4x5x5xf32>
    %102 = arith.subf %98, %101 : vector<4x5x5xf32>
    %103 = math.exp %102 : vector<4x5x5xf32>
    %cst_36 = arith.constant dense<0.000000e+00> : vector<4x5xf32>
    %104 = vector.multi_reduction <add>, %103, %cst_36 [2] : vector<4x5x5xf32> to vector<4x5xf32>
    %105 = vector.shape_cast %104 : vector<4x5xf32> to vector<4x5x1xf32>
    %106 = tpu.reciprocal %105 {approx = true} : vector<4x5x1xf32> -> vector<4x5x1xf32>
    %107 = vector.broadcast %106 : vector<4x5x1xf32> to vector<4x5x5xf32>
    %108 = arith.mulf %103, %107 : vector<4x5x5xf32>
    %109 = arith.truncf %108 : vector<4x5x5xf32> to vector<4x5x5xbf16>
    %110 = arith.truncf %95 : vector<4x5x8xf32> to vector<4x5x8xbf16>
    "tpu.trace_start"() <{level = 10 : i32, message = "hqk,hkd->hqd"}> : () -> ()
    %cst_37 = arith.constant dense<0.000000e+00> : vector<4x5x8xf32>
    %111 = tpu.matmul %109, %110, %cst_37 {dimension_numbers = #tpu.dot_dimension_numbers<[2], [1], [1], [2], [0, 0, 0, 1, 1, 2], [0], [0]>} : vector<4x5x5xbf16>, vector<4x5x8xbf16>, vector<4x5x8xf32> -> vector<4x5x8xf32>
    "tpu.trace_stop"() : () -> ()
    %112 = vector.extract_strided_slice %111 {offsets = [0, 0, 0], sizes = [1, 5, 8], strides = [1, 1, 1]} : vector<4x5x8xf32> to vector<1x5x8xf32>
    %113 = vector.shape_cast %112 : vector<1x5x8xf32> to vector<5x8xf32>
    %114 = vector.extract_strided_slice %111 {offsets = [1, 0, 0], sizes = [1, 5, 8], strides = [1, 1, 1]} : vector<4x5x8xf32> to vector<1x5x8xf32>
    %115 = vector.shape_cast %114 : vector<1x5x8xf32> to vector<5x8xf32>
    %116 = vector.extract_strided_slice %111 {offsets = [2, 0, 0], sizes = [1, 5, 8], strides = [1, 1, 1]} : vector<4x5x8xf32> to vector<1x5x8xf32>
    %117 = vector.shape_cast %116 : vector<1x5x8xf32> to vector<5x8xf32>
    %118 = vector.extract_strided_slice %111 {offsets = [3, 0, 0], sizes = [1, 5, 8], strides = [1, 1, 1]} : vector<4x5x8xf32> to vector<1x5x8xf32>
    %119 = vector.shape_cast %118 : vector<1x5x8xf32> to vector<5x8xf32>
    %120 = tpu.concatenate %113, %115, %117, %119 in 1 : vector<5x8xf32>, vector<5x8xf32>, vector<5x8xf32>, vector<5x8xf32> -> vector<5x32xf32>
    %c0_38 = arith.constant 0 : index
    %c0_39 = arith.constant 0 : index
    %c0_40 = arith.constant 0 : index
    %121 = vector.load %arg10[%c0_38, %c0_39, %c0_40] : memref<2x32x32xbf16, #tpu.memory_space<vmem>>, vector<1x32x32xbf16>
    %122 = vector.shape_cast %121 : vector<1x32x32xbf16> to vector<32x32xbf16>
    %123 = arith.truncf %120 : vector<5x32xf32> to vector<5x32xbf16>
    %cst_41 = arith.constant dense<0.000000e+00> : vector<5x32xf32>
    %124 = tpu.matmul %123, %122, %cst_41 {dimension_numbers = #tpu.dot_dimension_numbers<[1], [0], [0], [1], [0, 0, 1, 1], [], []>} : vector<5x32xbf16>, vector<32x32xbf16>, vector<5x32xf32> -> vector<5x32xf32>
    %125 = arith.addf %29, %124 : vector<5x32xf32>
    %c0_42 = arith.constant 0 : index
    %c0_43 = arith.constant 0 : index
    %c0_44 = arith.constant 0 : index
    %126 = vector.load %arg11[%c0_42, %c0_43, %c0_44] : memref<2x1x32xf32, #tpu.memory_space<vmem>>, vector<1x1x32xf32>
    %127 = vector.shape_cast %126 : vector<1x1x32xf32> to vector<1x32xf32>
    %128 = vector.broadcast %127 : vector<1x32xf32> to vector<5x32xf32>
    %129 = arith.addf %125, %128 : vector<5x32xf32>
    %c0_45 = arith.constant 0 : index
    %c0_46 = arith.constant 0 : index
    %c0_47 = arith.constant 0 : index
    %130 = vector.load %arg12[%c0_45, %c0_46, %c0_47] : memref<2x1x32xf32, #tpu.memory_space<vmem>>, vector<1x1x32xf32>
    %131 = vector.shape_cast %130 : vector<1x1x32xf32> to vector<1x32xf32>
    %c0_48 = arith.constant 0 : index
    %c0_49 = arith.constant 0 : index
    %c0_50 = arith.constant 0 : index
    %132 = vector.load %arg13[%c0_48, %c0_49, %c0_50] : memref<2x1x32xf32, #tpu.memory_space<vmem>>, vector<1x1x32xf32>
    %133 = vector.shape_cast %132 : vector<1x1x32xf32> to vector<1x32xf32>
    %cst_51 = arith.constant dense<0.000000e+00> : vector<5xf32>
    %134 = vector.multi_reduction <add>, %129, %cst_51 [1] : vector<5x32xf32> to vector<5xf32>
    %135 = vector.shape_cast %134 : vector<5xf32> to vector<5x1xf32>
    %cst_52 = arith.constant 3.200000e+01 : f32
    %136 = vector.broadcast %cst_52 : f32 to vector<5x1xf32>
    %137 = arith.divf %135, %136 : vector<5x1xf32>
    %138 = vector.broadcast %137 : vector<5x1xf32> to vector<5x32xf32>
    %139 = arith.subf %129, %138 : vector<5x32xf32>
    %140 = arith.mulf %139, %139 : vector<5x32xf32>
    %cst_53 = arith.constant dense<0.000000e+00> : vector<5xf32>
    %141 = vector.multi_reduction <add>, %140, %cst_53 [1] : vector<5x32xf32> to vector<5xf32>
    %142 = vector.shape_cast %141 : vector<5xf32> to vector<5x1xf32>
    %cst_54 = arith.constant 3.200000e+01 : f32
    %143 = vector.broadcast %cst_54 : f32 to vector<5x1xf32>
    %144 = arith.divf %142, %143 : vector<5x1xf32>
    %145 = vector.broadcast %137 : vector<5x1xf32> to vector<5x32xf32>
    %146 = arith.subf %129, %145 : vector<5x32xf32>
    %cst_55 = arith.constant 9.99999974E-6 : f32
    %147 = vector.broadcast %cst_55 : f32 to vector<5x1xf32>
    %148 = arith.addf %144, %147 : vector<5x1xf32>
    %149 = math.rsqrt %148 : vector<5x1xf32>
    %150 = vector.broadcast %149 : vector<5x1xf32> to vector<5x32xf32>
    %151 = arith.mulf %146, %150 : vector<5x32xf32>
    %152 = vector.broadcast %131 : vector<1x32xf32> to vector<5x32xf32>
    %153 = arith.mulf %151, %152 : vector<5x32xf32>
    %154 = vector.broadcast %133 : vector<1x32xf32> to vector<5x32xf32>
    %155 = arith.addf %153, %154 : vector<5x32xf32>
    %c0_56 = arith.constant 0 : index
    %c0_57 = arith.constant 0 : index
    %c0_58 = arith.constant 0 : index
    %156 = vector.load %arg14[%c0_56, %c0_57, %c0_58] : memref<2x32x128xbf16, #tpu.memory_space<vmem>>, vector<1x32x128xbf16>
    %157 = vector.shape_cast %156 : vector<1x32x128xbf16> to vector<32x128xbf16>
    %158 = arith.truncf %155 : vector<5x32xf32> to vector<5x32xbf16>
    %cst_59 = arith.constant dense<0.000000e+00> : vector<5x128xf32>
    %159 = tpu.matmul %158, %157, %cst_59 {dimension_numbers = #tpu.dot_dimension_numbers<[1], [0], [0], [1], [0, 0, 1, 1], [], []>} : vector<5x32xbf16>, vector<32x128xbf16>, vector<5x128xf32> -> vector<5x128xf32>
    %c0_60 = arith.constant 0 : index
    %c0_61 = arith.constant 0 : index
    %c0_62 = arith.constant 0 : index
    %160 = vector.load %arg15[%c0_60, %c0_61, %c0_62] : memref<2x1x128xf32, #tpu.memory_space<vmem>>, vector<1x1x128xf32>
    %161 = vector.shape_cast %160 : vector<1x1x128xf32> to vector<1x128xf32>
    %162 = vector.broadcast %161 : vector<1x128xf32> to vector<5x128xf32>
    %163 = arith.addf %159, %162 : vector<5x128xf32>
    %cst_63 = arith.constant 1.702000e+00 : f32
    %164 = vector.broadcast %cst_63 : f32 to vector<5x128xf32>
    %165 = arith.mulf %164, %163 : vector<5x128xf32>
    %166 = arith.negf %165 : vector<5x128xf32>
    %167 = math.exp %166 : vector<5x128xf32>
    %cst_64 = arith.constant 1.000000e+00 : f32
    %168 = vector.broadcast %cst_64 : f32 to vector<5x128xf32>
    %169 = arith.addf %168, %167 : vector<5x128xf32>
    %170 = arith.divf %168, %169 : vector<5x128xf32>
    %171 = arith.mulf %163, %170 : vector<5x128xf32>
    %c0_65 = arith.constant 0 : index
    %c0_66 = arith.constant 0 : index
    %c0_67 = arith.constant 0 : index
    %172 = vector.load %arg16[%c0_65, %c0_66, %c0_67] : memref<2x128x32xbf16, #tpu.memory_space<vmem>>, vector<1x128x32xbf16>
    %173 = vector.shape_cast %172 : vector<1x128x32xbf16> to vector<128x32xbf16>
    %174 = arith.truncf %171 : vector<5x128xf32> to vector<5x128xbf16>
    %cst_68 = arith.constant dense<0.000000e+00> : vector<5x32xf32>
    %175 = tpu.matmul %174, %173, %cst_68 {dimension_numbers = #tpu.dot_dimension_numbers<[1], [0], [0], [1], [0, 0, 1, 1], [], []>} : vector<5x128xbf16>, vector<128x32xbf16>, vector<5x32xf32> -> vector<5x32xf32>
    %176 = arith.addf %129, %175 : vector<5x32xf32>
    %c0_69 = arith.constant 0 : index
    %c0_70 = arith.constant 0 : index
    %c0_71 = arith.constant 0 : index
    %177 = vector.load %arg17[%c0_69, %c0_70, %c0_71] : memref<2x1x32xf32, #tpu.memory_space<vmem>>, vector<1x1x32xf32>
    %178 = vector.shape_cast %177 : vector<1x1x32xf32> to vector<1x32xf32>
    %179 = vector.broadcast %178 : vector<1x32xf32> to vector<5x32xf32>
    %180 = arith.addf %176, %179 : vector<5x32xf32>
    %c1 = arith.constant 1 : index
    %c0_72 = arith.constant 0 : index
    %c0_73 = arith.constant 0 : index
    %181 = vector.load %arg6[%c1, %c0_72, %c0_73] : memref<2x1x32xf32, #tpu.memory_space<vmem>>, vector<1x1x32xf32>
    %182 = vector.shape_cast %181 : vector<1x1x32xf32> to vector<1x32xf32>
    %c1_74 = arith.constant 1 : index
    %c0_75 = arith.constant 0 : index
    %c0_76 = arith.constant 0 : index
    %183 = vector.load %arg7[%c1_74, %c0_75, %c0_76] : memref<2x1x32xf32, #tpu.memory_space<vmem>>, vector<1x1x32xf32>
    %184 = vector.shape_cast %183 : vector<1x1x32xf32> to vector<1x32xf32>
    %cst_77 = arith.constant dense<0.000000e+00> : vector<5xf32>
    %185 = vector.multi_reduction <add>, %180, %cst_77 [1] : vector<5x32xf32> to vector<5xf32>
    %186 = vector.shape_cast %185 : vector<5xf32> to vector<5x1xf32>
    %cst_78 = arith.constant 3.200000e+01 : f32
    %187 = vector.broadcast %cst_78 : f32 to vector<5x1xf32>
    %188 = arith.divf %186, %187 : vector<5x1xf32>
    %189 = vector.broadcast %188 : vector<5x1xf32> to vector<5x32xf32>
    %190 = arith.subf %180, %189 : vector<5x32xf32>
    %191 = arith.mulf %190, %190 : vector<5x32xf32>
    %cst_79 = arith.constant dense<0.000000e+00> : vector<5xf32>
    %192 = vector.multi_reduction <add>, %191, %cst_79 [1] : vector<5x32xf32> to vector<5xf32>
    %193 = vector.shape_cast %192 : vector<5xf32> to vector<5x1xf32>
    %cst_80 = arith.constant 3.200000e+01 : f32
    %194 = vector.broadcast %cst_80 : f32 to vector<5x1xf32>
    %195 = arith.divf %193, %194 : vector<5x1xf32>
    %196 = vector.broadcast %188 : vector<5x1xf32> to vector<5x32xf32>
    %197 = arith.subf %180, %196 : vector<5x32xf32>
    %cst_81 = arith.constant 9.99999974E-6 : f32
    %198 = vector.broadcast %cst_81 : f32 to vector<5x1xf32>
    %199 = arith.addf %195, %198 : vector<5x1xf32>
    %200 = math.rsqrt %199 : vector<5x1xf32>
    %201 = vector.broadcast %200 : vector<5x1xf32> to vector<5x32xf32>
    %202 = arith.mulf %197, %201 : vector<5x32xf32>
    %203 = vector.broadcast %182 : vector<1x32xf32> to vector<5x32xf32>
    %204 = arith.mulf %202, %203 : vector<5x32xf32>
    %205 = vector.broadcast %184 : vector<1x32xf32> to vector<5x32xf32>
    %206 = arith.addf %204, %205 : vector<5x32xf32>
    %c1_82 = arith.constant 1 : index
    %c0_83 = arith.constant 0 : index
    %c0_84 = arith.constant 0 : index
    %207 = vector.load %arg8[%c1_82, %c0_83, %c0_84] : memref<2x32x96xbf16, #tpu.memory_space<vmem>>, vector<1x32x96xbf16>
    %208 = vector.shape_cast %207 : vector<1x32x96xbf16> to vector<32x96xbf16>
    %209 = arith.truncf %206 : vector<5x32xf32> to vector<5x32xbf16>
    %cst_85 = arith.constant dense<0.000000e+00> : vector<5x96xf32>
    %210 = tpu.matmul %209, %208, %cst_85 {dimension_numbers = #tpu.dot_dimension_numbers<[1], [0], [0], [1], [0, 0, 1, 1], [], []>} : vector<5x32xbf16>, vector<32x96xbf16>, vector<5x96xf32> -> vector<5x96xf32>
    %c1_86 = arith.constant 1 : index
    %c0_87 = arith.constant 0 : index
    %c0_88 = arith.constant 0 : index
    %211 = vector.load %arg9[%c1_86, %c0_87, %c0_88] : memref<2x1x96xf32, #tpu.memory_space<vmem>>, vector<1x1x96xf32>
    %212 = vector.shape_cast %211 : vector<1x1x96xf32> to vector<1x96xf32>
    %213 = vector.broadcast %212 : vector<1x96xf32> to vector<5x96xf32>
    %214 = arith.addf %210, %213 : vector<5x96xf32>
    %215 = vector.extract_strided_slice %214 {offsets = [0, 0], sizes = [5, 32], strides = [1, 1]} : vector<5x96xf32> to vector<5x32xf32>
    %cst_89 = arith.constant 0.353553385 : f32
    %216 = vector.broadcast %cst_89 : f32 to vector<5x32xf32>
    %217 = arith.mulf %215, %216 : vector<5x32xf32>
    %218 = vector.extract_strided_slice %214 {offsets = [0, 32], sizes = [5, 32], strides = [1, 1]} : vector<5x96xf32> to vector<5x32xf32>
    %219 = vector.extract_strided_slice %214 {offsets = [0, 64], sizes = [5, 32], strides = [1, 1]} : vector<5x96xf32> to vector<5x32xf32>
    %220 = vector.extract_strided_slice %217 {offsets = [0, 0], sizes = [5, 8], strides = [1, 1]} : vector<5x32xf32> to vector<5x8xf32>
    %221 = vector.extract_strided_slice %217 {offsets = [0, 8], sizes = [5, 8], strides = [1, 1]} : vector<5x32xf32> to vector<5x8xf32>
    %222 = vector.extract_strided_slice %217 {offsets = [0, 16], sizes = [5, 8], strides = [1, 1]} : vector<5x32xf32> to vector<5x8xf32>
    %223 = vector.extract_strided_slice %217 {offsets = [0, 24], sizes = [5, 8], strides = [1, 1]} : vector<5x32xf32> to vector<5x8xf32>
    %224 = vector.shape_cast %220 : vector<5x8xf32> to vector<1x5x8xf32>
    %225 = vector.shape_cast %221 : vector<5x8xf32> to vector<1x5x8xf32>
    %226 = vector.shape_cast %222 : vector<5x8xf32> to vector<1x5x8xf32>
    %227 = vector.shape_cast %223 : vector<5x8xf32> to vector<1x5x8xf32>
    %228 = tpu.concatenate %224, %225, %226, %227 in 0 : vector<1x5x8xf32>, vector<1x5x8xf32>, vector<1x5x8xf32>, vector<1x5x8xf32> -> vector<4x5x8xf32>
    %229 = vector.extract_strided_slice %218 {offsets = [0, 0], sizes = [5, 8], strides = [1, 1]} : vector<5x32xf32> to vector<5x8xf32>
    %230 = vector.extract_strided_slice %218 {offsets = [0, 8], sizes = [5, 8], strides = [1, 1]} : vector<5x32xf32> to vector<5x8xf32>
    %231 = vector.extract_strided_slice %218 {offsets = [0, 16], sizes = [5, 8], strides = [1, 1]} : vector<5x32xf32> to vector<5x8xf32>
    %232 = vector.extract_strided_slice %218 {offsets = [0, 24], sizes = [5, 8], strides = [1, 1]} : vector<5x32xf32> to vector<5x8xf32>
    %233 = vector.shape_cast %229 : vector<5x8xf32> to vector<1x5x8xf32>
    %234 = vector.shape_cast %230 : vector<5x8xf32> to vector<1x5x8xf32>
    %235 = vector.shape_cast %231 : vector<5x8xf32> to vector<1x5x8xf32>
    %236 = vector.shape_cast %232 : vector<5x8xf32> to vector<1x5x8xf32>
    %237 = tpu.concatenate %233, %234, %235, %236 in 0 : vector<1x5x8xf32>, vector<1x5x8xf32>, vector<1x5x8xf32>, vector<1x5x8xf32> -> vector<4x5x8xf32>
    %238 = vector.extract_strided_slice %219 {offsets = [0, 0], sizes = [5, 8], strides = [1, 1]} : vector<5x32xf32> to vector<5x8xf32>
    %239 = vector.extract_strided_slice %219 {offsets = [0, 8], sizes = [5, 8], strides = [1, 1]} : vector<5x32xf32> to vector<5x8xf32>
    %240 = vector.extract_strided_slice %219 {offsets = [0, 16], sizes = [5, 8], strides = [1, 1]} : vector<5x32xf32> to vector<5x8xf32>
    %241 = vector.extract_strided_slice %219 {offsets = [0, 24], sizes = [5, 8], strides = [1, 1]} : vector<5x32xf32> to vector<5x8xf32>
    %242 = vector.shape_cast %238 : vector<5x8xf32> to vector<1x5x8xf32>
    %243 = vector.shape_cast %239 : vector<5x8xf32> to vector<1x5x8xf32>
    %244 = vector.shape_cast %240 : vector<5x8xf32> to vector<1x5x8xf32>
    %245 = vector.shape_cast %241 : vector<5x8xf32> to vector<1x5x8xf32>
    %246 = tpu.concatenate %242, %243, %244, %245 in 0 : vector<1x5x8xf32>, vector<1x5x8xf32>, vector<1x5x8xf32>, vector<1x5x8xf32> -> vector<4x5x8xf32>
    %247 = arith.truncf %228 : vector<4x5x8xf32> to vector<4x5x8xbf16>
    %248 = arith.truncf %237 : vector<4x5x8xf32> to vector<4x5x8xbf16>
    "tpu.trace_start"() <{level = 10 : i32, message = "hqd,hkd->hqk"}> : () -> ()
    %cst_90 = arith.constant dense<0.000000e+00> : vector<4x5x5xf32>
    %249 = tpu.matmul %247, %248, %cst_90 {dimension_numbers = #tpu.dot_dimension_numbers<[2], [2], [1], [1], [0, 0, 0, 1, 1, 1], [0], [0]>} : vector<4x5x8xbf16>, vector<4x5x8xbf16>, vector<4x5x5xf32> -> vector<4x5x5xf32>
    "tpu.trace_stop"() : () -> ()
    %cst_91 = arith.constant dense<0xFF800000> : vector<4x5xf32>
    %250 = vector.multi_reduction <maximumf>, %249, %cst_91 [2] : vector<4x5x5xf32> to vector<4x5xf32>
    %251 = vector.shape_cast %250 : vector<4x5xf32> to vector<4x5x1xf32>
    %252 = vector.broadcast %251 : vector<4x5x1xf32> to vector<4x5x5xf32>
    %253 = arith.subf %249, %252 : vector<4x5x5xf32>
    %254 = math.exp %253 : vector<4x5x5xf32>
    %cst_92 = arith.constant dense<0.000000e+00> : vector<4x5xf32>
    %255 = vector.multi_reduction <add>, %254, %cst_92 [2] : vector<4x5x5xf32> to vector<4x5xf32>
    %256 = vector.shape_cast %255 : vector<4x5xf32> to vector<4x5x1xf32>
    %257 = tpu.reciprocal %256 {approx = true} : vector<4x5x1xf32> -> vector<4x5x1xf32>
    %258 = vector.broadcast %257 : vector<4x5x1xf32> to vector<4x5x5xf32>
    %259 = arith.mulf %254, %258 : vector<4x5x5xf32>
    %260 = arith.truncf %259 : vector<4x5x5xf32> to vector<4x5x5xbf16>
    %261 = arith.truncf %246 : vector<4x5x8xf32> to vector<4x5x8xbf16>
    "tpu.trace_start"() <{level = 10 : i32, message = "hqk,hkd->hqd"}> : () -> ()
    %cst_93 = arith.constant dense<0.000000e+00> : vector<4x5x8xf32>
    %262 = tpu.matmul %260, %261, %cst_93 {dimension_numbers = #tpu.dot_dimension_numbers<[2], [1], [1], [2], [0, 0, 0, 1, 1, 2], [0], [0]>} : vector<4x5x5xbf16>, vector<4x5x8xbf16>, vector<4x5x8xf32> -> vector<4x5x8xf32>
    "tpu.trace_stop"() : () -> ()
    %263 = vector.extract_strided_slice %262 {offsets = [0, 0, 0], sizes = [1, 5, 8], strides = [1, 1, 1]} : vector<4x5x8xf32> to vector<1x5x8xf32>
    %264 = vector.shape_cast %263 : vector<1x5x8xf32> to vector<5x8xf32>
    %265 = vector.extract_strided_slice %262 {offsets = [1, 0, 0], sizes = [1, 5, 8], strides = [1, 1, 1]} : vector<4x5x8xf32> to vector<1x5x8xf32>
    %266 = vector.shape_cast %265 : vector<1x5x8xf32> to vector<5x8xf32>
    %267 = vector.extract_strided_slice %262 {offsets = [2, 0, 0], sizes = [1, 5, 8], strides = [1, 1, 1]} : vector<4x5x8xf32> to vector<1x5x8xf32>
    %268 = vector.shape_cast %267 : vector<1x5x8xf32> to vector<5x8xf32>
    %269 = vector.extract_strided_slice %262 {offsets = [3, 0, 0], sizes = [1, 5, 8], strides = [1, 1, 1]} : vector<4x5x8xf32> to vector<1x5x8xf32>
    %270 = vector.shape_cast %269 : vector<1x5x8xf32> to vector<5x8xf32>
    %271 = tpu.concatenate %264, %266, %268, %270 in 1 : vector<5x8xf32>, vector<5x8xf32>, vector<5x8xf32>, vector<5x8xf32> -> vector<5x32xf32>
    %c1_94 = arith.constant 1 : index
    %c0_95 = arith.constant 0 : index
    %c0_96 = arith.constant 0 : index
    %272 = vector.load %arg10[%c1_94, %c0_95, %c0_96] : memref<2x32x32xbf16, #tpu.memory_space<vmem>>, vector<1x32x32xbf16>
    %273 = vector.shape_cast %272 : vector<1x32x32xbf16> to vector<32x32xbf16>
    %274 = arith.truncf %271 : vector<5x32xf32> to vector<5x32xbf16>
    %cst_97 = arith.constant dense<0.000000e+00> : vector<5x32xf32>
    %275 = tpu.matmul %274, %273, %cst_97 {dimension_numbers = #tpu.dot_dimension_numbers<[1], [0], [0], [1], [0, 0, 1, 1], [], []>} : vector<5x32xbf16>, vector<32x32xbf16>, vector<5x32xf32> -> vector<5x32xf32>
    %276 = arith.addf %180, %275 : vector<5x32xf32>
    %c1_98 = arith.constant 1 : index
    %c0_99 = arith.constant 0 : index
    %c0_100 = arith.constant 0 : index
    %277 = vector.load %arg11[%c1_98, %c0_99, %c0_100] : memref<2x1x32xf32, #tpu.memory_space<vmem>>, vector<1x1x32xf32>
    %278 = vector.shape_cast %277 : vector<1x1x32xf32> to vector<1x32xf32>
    %279 = vector.broadcast %278 : vector<1x32xf32> to vector<5x32xf32>
    %280 = arith.addf %276, %279 : vector<5x32xf32>
    %c1_101 = arith.constant 1 : index
    %c0_102 = arith.constant 0 : index
    %c0_103 = arith.constant 0 : index
    %281 = vector.load %arg12[%c1_101, %c0_102, %c0_103] : memref<2x1x32xf32, #tpu.memory_space<vmem>>, vector<1x1x32xf32>
    %282 = vector.shape_cast %281 : vector<1x1x32xf32> to vector<1x32xf32>
    %c1_104 = arith.constant 1 : index
    %c0_105 = arith.constant 0 : index
    %c0_106 = arith.constant 0 : index
    %283 = vector.load %arg13[%c1_104, %c0_105, %c0_106] : memref<2x1x32xf32, #tpu.memory_space<vmem>>, vector<1x1x32xf32>
    %284 = vector.shape_cast %283 : vector<1x1x32xf32> to vector<1x32xf32>
    %cst_107 = arith.constant dense<0.000000e+00> : vector<5xf32>
    %285 = vector.multi_reduction <add>, %280, %cst_107 [1] : vector<5x32xf32> to vector<5xf32>
    %286 = vector.shape_cast %285 : vector<5xf32> to vector<5x1xf32>
    %cst_108 = arith.constant 3.200000e+01 : f32
    %287 = vector.broadcast %cst_108 : f32 to vector<5x1xf32>
    %288 = arith.divf %286, %287 : vector<5x1xf32>
    %289 = vector.broadcast %288 : vector<5x1xf32> to vector<5x32xf32>
    %290 = arith.subf %280, %289 : vector<5x32xf32>
    %291 = arith.mulf %290, %290 : vector<5x32xf32>
    %cst_109 = arith.constant dense<0.000000e+00> : vector<5xf32>
    %292 = vector.multi_reduction <add>, %291, %cst_109 [1] : vector<5x32xf32> to vector<5xf32>
    %293 = vector.shape_cast %292 : vector<5xf32> to vector<5x1xf32>
    %cst_110 = arith.constant 3.200000e+01 : f32
    %294 = vector.broadcast %cst_110 : f32 to vector<5x1xf32>
    %295 = arith.divf %293, %294 : vector<5x1xf32>
    %296 = vector.broadcast %288 : vector<5x1xf32> to vector<5x32xf32>
    %297 = arith.subf %280, %296 : vector<5x32xf32>
    %cst_111 = arith.constant 9.99999974E-6 : f32
    %298 = vector.broadcast %cst_111 : f32 to vector<5x1xf32>
    %299 = arith.addf %295, %298 : vector<5x1xf32>
    %300 = math.rsqrt %299 : vector<5x1xf32>
    %301 = vector.broadcast %300 : vector<5x1xf32> to vector<5x32xf32>
    %302 = arith.mulf %297, %301 : vector<5x32xf32>
    %303 = vector.broadcast %282 : vector<1x32xf32> to vector<5x32xf32>
    %304 = arith.mulf %302, %303 : vector<5x32xf32>
    %305 = vector.broadcast %284 : vector<1x32xf32> to vector<5x32xf32>
    %306 = arith.addf %304, %305 : vector<5x32xf32>
    %c1_112 = arith.constant 1 : index
    %c0_113 = arith.constant 0 : index
    %c0_114 = arith.constant 0 : index
    %307 = vector.load %arg14[%c1_112, %c0_113, %c0_114] : memref<2x32x128xbf16, #tpu.memory_space<vmem>>, vector<1x32x128xbf16>
    %308 = vector.shape_cast %307 : vector<1x32x128xbf16> to vector<32x128xbf16>
    %309 = arith.truncf %306 : vector<5x32xf32> to vector<5x32xbf16>
    %cst_115 = arith.constant dense<0.000000e+00> : vector<5x128xf32>
    %310 = tpu.matmul %309, %308, %cst_115 {dimension_numbers = #tpu.dot_dimension_numbers<[1], [0], [0], [1], [0, 0, 1, 1], [], []>} : vector<5x32xbf16>, vector<32x128xbf16>, vector<5x128xf32> -> vector<5x128xf32>
    %c1_116 = arith.constant 1 : index
    %c0_117 = arith.constant 0 : index
    %c0_118 = arith.constant 0 : index
    %311 = vector.load %arg15[%c1_116, %c0_117, %c0_118] : memref<2x1x128xf32, #tpu.memory_space<vmem>>, vector<1x1x128xf32>
    %312 = vector.shape_cast %311 : vector<1x1x128xf32> to vector<1x128xf32>
    %313 = vector.broadcast %312 : vector<1x128xf32> to vector<5x128xf32>
    %314 = arith.addf %310, %313 : vector<5x128xf32>
    %cst_119 = arith.constant 1.702000e+00 : f32
    %315 = vector.broadcast %cst_119 : f32 to vector<5x128xf32>
    %316 = arith.mulf %315, %314 : vector<5x128xf32>
    %317 = arith.negf %316 : vector<5x128xf32>
    %318 = math.exp %317 : vector<5x128xf32>
    %cst_120 = arith.constant 1.000000e+00 : f32
    %319 = vector.broadcast %cst_120 : f32 to vector<5x128xf32>
    %320 = arith.addf %319, %318 : vector<5x128xf32>
    %321 = arith.divf %319, %320 : vector<5x128xf32>
    %322 = arith.mulf %314, %321 : vector<5x128xf32>
    %c1_121 = arith.constant 1 : index
    %c0_122 = arith.constant 0 : index
    %c0_123 = arith.constant 0 : index
    %323 = vector.load %arg16[%c1_121, %c0_122, %c0_123] : memref<2x128x32xbf16, #tpu.memory_space<vmem>>, vector<1x128x32xbf16>
    %324 = vector.shape_cast %323 : vector<1x128x32xbf16> to vector<128x32xbf16>
    %325 = arith.truncf %322 : vector<5x128xf32> to vector<5x128xbf16>
    %cst_124 = arith.constant dense<0.000000e+00> : vector<5x32xf32>
    %326 = tpu.matmul %325, %324, %cst_124 {dimension_numbers = #tpu.dot_dimension_numbers<[1], [0], [0], [1], [0, 0, 1, 1], [], []>} : vector<5x128xbf16>, vector<128x32xbf16>, vector<5x32xf32> -> vector<5x32xf32>
    %327 = arith.addf %280, %326 : vector<5x32xf32>
    %c1_125 = arith.constant 1 : index
    %c0_126 = arith.constant 0 : index
    %c0_127 = arith.constant 0 : index
    %328 = vector.load %arg17[%c1_125, %c0_126, %c0_127] : memref<2x1x32xf32, #tpu.memory_space<vmem>>, vector<1x1x32xf32>
    %329 = vector.shape_cast %328 : vector<1x1x32xf32> to vector<1x32xf32>
    %330 = vector.broadcast %329 : vector<1x32xf32> to vector<5x32xf32>
    %331 = arith.addf %327, %330 : vector<5x32xf32>
    %332 = vector.extract_strided_slice %331 {offsets = [0, 0], sizes = [1, 32], strides = [1, 1]} : vector<5x32xf32> to vector<1x32xf32>
    %c0_128 = arith.constant 0 : index
    %c0_129 = arith.constant 0 : index
    %333 = vector.load %arg18[%c0_128, %c0_129] : memref<1x32xf32, #tpu.memory_space<vmem>>, vector<1x32xf32>
    %c0_130 = arith.constant 0 : index
    %c0_131 = arith.constant 0 : index
    %334 = vector.load %arg19[%c0_130, %c0_131] : memref<1x32xf32, #tpu.memory_space<vmem>>, vector<1x32xf32>
    %cst_132 = arith.constant dense<0.000000e+00> : vector<1xf32>
    %335 = vector.multi_reduction <add>, %332, %cst_132 [1] : vector<1x32xf32> to vector<1xf32>
    %336 = vector.shape_cast %335 : vector<1xf32> to vector<1x1xf32>
    %cst_133 = arith.constant 3.200000e+01 : f32
    %337 = vector.broadcast %cst_133 : f32 to vector<1x1xf32>
    %338 = arith.divf %336, %337 : vector<1x1xf32>
    %339 = vector.broadcast %338 : vector<1x1xf32> to vector<1x32xf32>
    %340 = arith.subf %332, %339 : vector<1x32xf32>
    %341 = arith.mulf %340, %340 : vector<1x32xf32>
    %cst_134 = arith.constant dense<0.000000e+00> : vector<1xf32>
    %342 = vector.multi_reduction <add>, %341, %cst_134 [1] : vector<1x32xf32> to vector<1xf32>
    %343 = vector.shape_cast %342 : vector<1xf32> to vector<1x1xf32>
    %cst_135 = arith.constant 3.200000e+01 : f32
    %344 = vector.broadcast %cst_135 : f32 to vector<1x1xf32>
    %345 = arith.divf %343, %344 : vector<1x1xf32>
    %346 = vector.broadcast %338 : vector<1x1xf32> to vector<1x32xf32>
    %347 = arith.subf %332, %346 : vector<1x32xf32>
    %cst_136 = arith.constant 9.99999974E-6 : f32
    %348 = vector.broadcast %cst_136 : f32 to vector<1x1xf32>
    %349 = arith.addf %345, %348 : vector<1x1xf32>
    %350 = math.rsqrt %349 : vector<1x1xf32>
    %351 = vector.broadcast %350 : vector<1x1xf32> to vector<1x32xf32>
    %352 = arith.mulf %347, %351 : vector<1x32xf32>
    %353 = arith.mulf %352, %333 : vector<1x32xf32>
    %354 = arith.addf %353, %334 : vector<1x32xf32>
    %c0_137 = arith.constant 0 : index
    %c0_138 = arith.constant 0 : index
    %355 = vector.load %arg20[%c0_137, %c0_138] : memref<32x16xbf16, #tpu.memory_space<vmem>>, vector<32x16xbf16>
    %356 = arith.truncf %354 : vector<1x32xf32> to vector<1x32xbf16>
    %cst_139 = arith.constant dense<0.000000e+00> : vector<1x16xf32>
    %357 = tpu.matmul %356, %355, %cst_139 {dimension_numbers = #tpu.dot_dimension_numbers<[1], [0], [0], [1], [0, 0, 1, 1], [], []>} : vector<1x32xbf16>, vector<32x16xbf16>, vector<1x16xf32> -> vector<1x16xf32>
    %c0_140 = arith.constant 0 : index
    %c0_141 = arith.constant 0 : index
    %358 = vector.load %arg21[%c0_140, %c0_141] : memref<16x24xbf16, #tpu.memory_space<vmem>>, vector<16x24xbf16>
    %359 = arith.truncf %357 : vector<1x16xf32> to vector<1x16xbf16>
    %cst_142 = arith.constant dense<0.000000e+00> : vector<1x24xf32>
    %360 = tpu.matmul %359, %358, %cst_142 {dimension_numbers = #tpu.dot_dimension_numbers<[1], [0], [0], [1], [0, 0, 1, 1], [], []>} : vector<1x16xbf16>, vector<16x24xbf16>, vector<1x24xf32> -> vector<1x24xf32>
    %c0_143 = arith.constant 0 : index
    %c0_144 = arith.constant 0 : index
    %361 = vector.load %arg22[%c0_143, %c0_144] : memref<1x24xf32, #tpu.memory_space<vmem>>, vector<1x24xf32>
    %362 = arith.addf %360, %361 : vector<1x24xf32>
    %c0_145 = arith.constant 0 : index
    %c0_146 = arith.constant 0 : index
    %c0_147 = arith.constant 0 : index
    %363 = vector.load %arg23[%c0_145, %c0_146, %c0_147] : memref<1x1x24xf32, #tpu.memory_space<vmem>>, vector<1x1x24xf32>
    %364 = vector.shape_cast %363 : vector<1x1x24xf32> to vector<1x24xf32>
    %365 = vector.shape_cast %362 : vector<1x24xf32> to vector<1x1x24xf32>
    tpu.vector_store %arg23[%c0_145, %c0_146, %c0_147], %365 {strides = array<i32>} : memref<1x1x24xf32, #tpu.memory_space<vmem>>, vector<1x1x24xf32>,
    return
  }
  func.func @transform_0(%arg0: i32) -> (i32, i32, i32) {
    %c0_i32 = arith.constant 0 : i32
    %c0_i32_0 = arith.constant 0 : i32
    %c0_i32_1 = arith.constant 0 : i32
    return %arg0, %c0_i32, %c0_i32_0 : i32, i32, i32
  }
  func.func @transform_1(%arg0: i32) -> (i32, i32) {
    %c0_i32 = arith.constant 0 : i32
    %c0_i32_0 = arith.constant 0 : i32
    %c0_i32_1 = arith.constant 0 : i32
    return %c0_i32, %c0_i32_0 : i32, i32
  }
  func.func @transform_2(%arg0: i32) -> (i32, i32) {
    %c0_i32 = arith.constant 0 : i32
    %c0_i32_0 = arith.constant 0 : i32
    %c0_i32_1 = arith.constant 0 : i32
    return %c0_i32, %c0_i32_0 : i32, i32
  }
  func.func @transform_3(%arg0: i32) -> (i32, i32) {
    %c0_i32 = arith.constant 0 : i32
    %c0_i32_0 = arith.constant 0 : i32
    %c0_i32_1 = arith.constant 0 : i32
    return %c0_i32, %c0_i32_0 : i32, i32
  }
  func.func @transform_4(%arg0: i32) -> (i32, i32) {
    %c0_i32 = arith.constant 0 : i32
    %c0_i32_0 = arith.constant 0 : i32
    %c0_i32_1 = arith.constant 0 : i32
    return %c0_i32, %c0_i32_0 : i32, i32
  }
  func.func @transform_5(%arg0: i32) -> (i32, i32, i32) {
    %c0_i32 = arith.constant 0 : i32
    %c0_i32_0 = arith.constant 0 : i32
    %c0_i32_1 = arith.constant 0 : i32
    %c0_i32_2 = arith.constant 0 : i32
    return %c0_i32, %c0_i32_0, %c0_i32_1 : i32, i32, i32
  }
  func.func @transform_6(%arg0: i32) -> (i32, i32, i32) {
    %c0_i32 = arith.constant 0 : i32
    %c0_i32_0 = arith.constant 0 : i32
    %c0_i32_1 = arith.constant 0 : i32
    %c0_i32_2 = arith.constant 0 : i32
    return %c0_i32, %c0_i32_0, %c0_i32_1 : i32, i32, i32
  }
  func.func @transform_7(%arg0: i32) -> (i32, i32, i32) {
    %c0_i32 = arith.constant 0 : i32
    %c0_i32_0 = arith.constant 0 : i32
    %c0_i32_1 = arith.constant 0 : i32
    %c0_i32_2 = arith.constant 0 : i32
    return %c0_i32, %c0_i32_0, %c0_i32_1 : i32, i32, i32
  }
  func.func @transform_8(%arg0: i32) -> (i32, i32, i32) {
    %c0_i32 = arith.constant 0 : i32
    %c0_i32_0 = arith.constant 0 : i32
    %c0_i32_1 = arith.constant 0 : i32
    %c0_i32_2 = arith.constant 0 : i32
    return %c0_i32, %c0_i32_0, %c0_i32_1 : i32, i32, i32
  }
  func.func @transform_9(%arg0: i32) -> (i32, i32, i32) {
    %c0_i32 = arith.constant 0 : i32
    %c0_i32_0 = arith.constant 0 : i32
    %c0_i32_1 = arith.constant 0 : i32
    %c0_i32_2 = arith.constant 0 : i32
    return %c0_i32, %c0_i32_0, %c0_i32_1 : i32, i32, i32
  }
  func.func @transform_10(%arg0: i32) -> (i32, i32, i32) {
    %c0_i32 = arith.constant 0 : i32
    %c0_i32_0 = arith.constant 0 : i32
    %c0_i32_1 = arith.constant 0 : i32
    %c0_i32_2 = arith.constant 0 : i32
    return %c0_i32, %c0_i32_0, %c0_i32_1 : i32, i32, i32
  }
  func.func @transform_11(%arg0: i32) -> (i32, i32, i32) {
    %c0_i32 = arith.constant 0 : i32
    %c0_i32_0 = arith.constant 0 : i32
    %c0_i32_1 = arith.constant 0 : i32
    %c0_i32_2 = arith.constant 0 : i32
    return %c0_i32, %c0_i32_0, %c0_i32_1 : i32, i32, i32
  }
  func.func @transform_12(%arg0: i32) -> (i32, i32, i32) {
    %c0_i32 = arith.constant 0 : i32
    %c0_i32_0 = arith.constant 0 : i32
    %c0_i32_1 = arith.constant 0 : i32
    %c0_i32_2 = arith.constant 0 : i32
    return %c0_i32, %c0_i32_0, %c0_i32_1 : i32, i32, i32
  }
  func.func @transform_13(%arg0: i32) -> (i32, i32, i32) {
    %c0_i32 = arith.constant 0 : i32
    %c0_i32_0 = arith.constant 0 : i32
    %c0_i32_1 = arith.constant 0 : i32
    %c0_i32_2 = arith.constant 0 : i32
    return %c0_i32, %c0_i32_0, %c0_i32_1 : i32, i32, i32
  }
  func.func @transform_14(%arg0: i32) -> (i32, i32, i32) {
    %c0_i32 = arith.constant 0 : i32
    %c0_i32_0 = arith.constant 0 : i32
    %c0_i32_1 = arith.constant 0 : i32
    %c0_i32_2 = arith.constant 0 : i32
    return %c0_i32, %c0_i32_0, %c0_i32_1 : i32, i32, i32
  }
  func.func @transform_15(%arg0: i32) -> (i32, i32, i32) {
    %c0_i32 = arith.constant 0 : i32
    %c0_i32_0 = arith.constant 0 : i32
    %c0_i32_1 = arith.constant 0 : i32
    %c0_i32_2 = arith.constant 0 : i32
    return %c0_i32, %c0_i32_0, %c0_i32_1 : i32, i32, i32
  }
  func.func @transform_16(%arg0: i32) -> (i32, i32, i32) {
    %c0_i32 = arith.constant 0 : i32
    %c0_i32_0 = arith.constant 0 : i32
    %c0_i32_1 = arith.constant 0 : i32
    %c0_i32_2 = arith.constant 0 : i32
    return %c0_i32, %c0_i32_0, %c0_i32_1 : i32, i32, i32
  }
  func.func @transform_17(%arg0: i32) -> (i32, i32) {
    %c0_i32 = arith.constant 0 : i32
    %c0_i32_0 = arith.constant 0 : i32
    %c0_i32_1 = arith.constant 0 : i32
    return %c0_i32, %c0_i32_0 : i32, i32
  }
  func.func @transform_18(%arg0: i32) -> (i32, i32) {
    %c0_i32 = arith.constant 0 : i32
    %c0_i32_0 = arith.constant 0 : i32
    %c0_i32_1 = arith.constant 0 : i32
    return %c0_i32, %c0_i32_0 : i32, i32
  }
  func.func @transform_19(%arg0: i32) -> (i32, i32) {
    %c0_i32 = arith.constant 0 : i32
    %c0_i32_0 = arith.constant 0 : i32
    %c0_i32_1 = arith.constant 0 : i32
    return %c0_i32, %c0_i32_0 : i32, i32
  }
  func.func @transform_20(%arg0: i32) -> (i32, i32) {
    %c0_i32 = arith.constant 0 : i32
    %c0_i32_0 = arith.constant 0 : i32
    %c0_i32_1 = arith.constant 0 : i32
    return %c0_i32, %c0_i32_0 : i32, i32
  }
  func.func @transform_21(%arg0: i32) -> (i32, i32) {
    %c0_i32 = arith.constant 0 : i32
    %c0_i32_0 = arith.constant 0 : i32
    %c0_i32_1 = arith.constant 0 : i32
    return %c0_i32, %c0_i32_0 : i32, i32
  }
  func.func @transform_22(%arg0: i32) -> (i32, i32, i32) {
    %c0_i32 = arith.constant 0 : i32
    %c0_i32_0 = arith.constant 0 : i32
    %c0_i32_1 = arith.constant 0 : i32
    return %arg0, %c0_i32, %c0_i32_0 : i32, i32, i32
  }
}

</mosaic_0001>

<bundles_post_ra>
// kernel: clip_based_encoder.1
= control target key start
LH: loop header
LB: loop body
LE: loop exit
PB: predicated region body
PF: predicated region fallthrough
CT: control target
= control target key end

     0   :  { %s4107_s0 = inlined_call_operand.vmem [shape: bf16[2,5,192], index: 0, kind: input, shape index: {}]   ;;  %s4108_s1 = inlined_call_operand.vmem [shape: bf16[192,32], index: 1, kind: input, shape index: {}]   ;;  %s4109_s2 = inlined_call_operand.vmem [shape: f32[5,32], index: 2, kind: input, shape index: {}]   ;;  %s4110_s3 = inlined_call_operand.vmem [shape: f32[1,32], index: 3, kind: input, shape index: {}]   ;;  %s4111_s4 = inlined_call_operand.vmem [shape: f32[1,32], index: 4, kind: input, shape index: {}]   ;;  %s4112_s5 = inlined_call_operand.vmem [shape: f32[2,1,32], index: 5, kind: input, shape index: {}]   ;;  %s4113_s6 = inlined_call_operand.vmem [shape: f32[2,1,32], index: 6, kind: input, shape index: {}]   ;;  %s4114_s7 = inlined_call_operand.vmem [shape: bf16[2,32,96], index: 7, kind: input, shape index: {}]   ;;  %s4115_s8 = inlined_call_operand.vmem [shape: f32[2,1,96], index: 8, kind: input, shape index: {}]   ;;  %s4116_s9 = inlined_call_operand.vmem [shape: bf16[2,32,32], index: 9, kind: input, shape index: {}]   ;;  %s4117_s10 = inlined_call_operand.vmem [shape: f32[2,1,32], index: 10, kind: input, shape index: {}]   ;;  %s4118_s11 = inlined_call_operand.vmem [shape: f32[2,1,32], index: 11, kind: input, shape index: {}]   ;;  %s4119_s12 = inlined_call_operand.vmem [shape: f32[2,1,32], index: 12, kind: input, shape index: {}]   ;;  %s4120_s13 = inlined_call_operand.vmem [shape: bf16[2,32,128], index: 13, kind: input, shape index: {}]   ;;  %s4121_s14 = inlined_call_operand.vmem [shape: f32[2,1,128], index: 14, kind: input, shape index: {}]   ;;  %s4122_s15 = inlined_call_operand.vmem [shape: bf16[2,128,32], index: 15, kind: input, shape index: {}]   ;;  %s4123_s16 = inlined_call_operand.vmem [shape: f32[2,1,32], index: 16, kind: input, shape index: {}]   ;;  %s4124_s17 = inlined_call_operand.vmem [shape: f32[1,32], index: 17, kind: input, shape index: {}]   ;;  %s4125_s18 = inlined_call_operand.vmem [shape: f32[1,32], index: 18, kind: input, shape index: {}]   ;;  %s4126_s19 = inlined_call_operand.vmem [shape: bf16[32,16], index: 19, kind: input, shape index: {}]   ;;  %s4127_s20 = inlined_call_operand.vmem [shape: bf16[16,24], index: 20, kind: input, shape index: {}]   ;;  %s4128_s21 = inlined_call_operand.vmem [shape: f32[1,24], index: 21, kind: input, shape index: {}]   ;;  %s4129_s22 = inlined_call_operand.hbm [shape: f32[2,1,24], index: 22, kind: output, shape index: {}]  }
   0x1   :  { %4147 = sst [smem:[#allocation11_spill]] %s4107_s0 }
   0x2   :  { %4148 = sst [smem:[#allocation12_spill]] %s4108_s1 }
   0x3   :  { %4149 = sst [smem:[#allocation13_spill]] %s4109_s2 }
   0x4   :  { %4150 = sst [smem:[#allocation14_spill]] %s4110_s3 }
   0x5   :  { %4151 = sst [smem:[#allocation15_spill]] %s4111_s4 }
   0x6   :  { %4152 = sst [smem:[#allocation16_spill]] %s4112_s5 }
   0x7   :  { %4153 = sst [smem:[#allocation17_spill]] %s4113_s6 }
   0x8   :  { %4154 = sst [smem:[#allocation18_spill]] %s4114_s7 }
   0x9   :  { %4155 = sst [smem:[#allocation19_spill]] %s4129_s22 }
   0xa   :  { %27 = vsyncpa [#allocation3], 0 }
   0xb   :  { %29 = vsyncpa [#allocation3 + $0x1], 0  ;;  %s3557_s3 = smov 0   ;;  %s3559_s28 = smov 0  }
   0xc   :  { %s3561_s29 = smov 0   ;;  %s3563_s30 = smov 0  }
   0xd LB: > { %4156 = sst [smem:[#allocation5_spill]] %s3415_s3  ;;  %s3578_s4 = sadd.s32 4294967295, %s3427_s30   ;;  %s3427_s30 = sphi %s3563_s30, %s4181_s30   ;;  %s3423_s29 = sphi %s3561_s29, %s4183_s29   ;;  %s3419_s28 = sphi %s3559_s28, %s4185_s28   ;;  %s3415_s3 = sphi %s3557_s3, %s4184_s3  }
   0xe   : > { %4157 = sst [smem:[#allocation6_spill]] %s3423_s29  ;;  %s2810_s0 = sadd.s32 4294967294, %s3427_s30  }
   0xf   : > { %4158 = sst [smem:[#allocation7_spill]] %s3427_s30  ;;  %s3582_s23 = sadd.s32 1, %s3427_s30  }
  0x10   : > { %4159 = sst [smem:[#allocation8_spill]] %s3582_s23  ;;  %s509_s1 = sadd.s32 1, %s3423_s29 }
  0x11   : > { %s506_s5 = ssub.s32 %s3427_s30, %s3582_s23  ;;  %p519_p0 = scmp.ne.s32.totalorder %s3423_s29, %s3419_s28 }
  0x12   : > { %p507_p1 = scmp.eq.s32.totalorder %s506_s5, 0  ;;  %p520_p2 = scmp.eq.s32.totalorder %s3578_s4, 1 }
  0x13   : > { %p525_p3 = scmp.ne.s32.totalorder %s3419_s28, %s3415_s3  ;;  %p526_p4 = scmp.eq.s32.totalorder %s2810_s0, 1 }
  0x14   : > { %s3593_s24 = scalar_select %p507_p1, %s3423_s29, %s509_s1  }
  0x15   : > { %p3595_p5 = por %p520_p2, %p519_p0  ;;  %p3599_p6 = por %p526_p4, %p525_p3 }
  0x16   : > { %4160 = sst [smem:[#allocation9_spill]] %s3593_s24  ;;  %p2813_p7 = scmp.ge.s32.totalorder %s3427_s30, 1 }
  0x17   : > { %s4162_s25 = scalar_select %p3599_p6, 1, 0 }
  0x18   : > { %p615_p8 = scmp.lt.s32.totalorder %s3427_s30, 3 }
  0x19   : > { %4163 = sst [smem:[#allocation10_spill]] %s4162_s25 }
  0x1a   : > { %p616_p9 = pnand %p2813_p7, %p615_p8 }
  0x1b   : > { %s4164_s27 = sld [smem:[#allocation12_spill]] (!%p616_p9)  ;;  %v3429_v1 = vmov (!%p616_p9), 0   ;;  %p676_p10 = scmp.lt.s32.totalorder (!%p616_p9), %s3578_s4, 1  ;;  %vm786_vm0 = vcmask (!%p616_p9), 523264   ;;  %vm832_vm1 = vcmask (!%p616_p9), 258048   ;;  %v3430_v44 = vmov (!%p616_p9), 0.0  }
  0x1c   : > { %619 = sbr.rel (%p616_p9) target bundleno = 6676 (0x1a14), region = 108  ;;  %790 = vmatprep.subr.bf16.mxu0 (!%p616_p9), %v3429_v1  ;;  %s4165_s25 = sld [smem:[#allocation11_spill]] (!%p616_p9)  ;;  %3019 = vmatprep.subr.bf16.mxu1 (!%p616_p9), %v3430_v44  ;;  %vm3431_vm2 = vmmov (!%p616_p9), 0   ;;  %vm914_vm3 = vcmask (!%p616_p9), 261120   ;;  %v2835_v56 = vld [vmem:[%s4115_s8] ss:$0 sm:$0xff] (!%p616_p9) }
  0x1d   : > { %s4166_s30 = sld [smem:[#allocation13_spill]] (!%p616_p9)  ;;  %s4168_s0 = sld [smem:[#allocation15_spill]] (!%p616_p9)  ;;  %3023 = vmatprep.mubr.msk.bf16.mxu1 (!%p616_p9), %vm3431_vm2, %v3430_v44  ;;  %vm990_vm4 = vcmask (!%p616_p9), 64512   ;;  %vm1184_vm5 = vcmask (!%p616_p9), 36864   ;;  %vm1239_vm6 = vcmask (!%p616_p9), 1041408   ;;  %vm1240_vm7 = vcmask (!%p616_p9), 1042432  }
  0x1e   : > { %s4169_s7 = sld [smem:[#allocation18_spill]] (!%p616_p9)  ;;  %s4171_s26 = sld [smem:[#allocation17_spill]] (!%p616_p9)  ;;  %vm1235_vm8 = vcmask (!%p616_p9), 39936   ;;  %vm1443_vm9 = vcmask (!%p616_p9), 130048   ;;  %vm1445_vm10 = vcmask (!%p616_p9), 195584   ;;  %vm2611_vm11 = vcmask (!%p616_p9), 253952  }
  0x1f   : > { %s3432_s1 = smov (!%p616_p9), 112   ;;  %s3433_s29 = smov (!%p616_p9), 120   ;;  %vm2740_vm12 = vcmask (!%p616_p9), 188416  }
  0x20   : > { %s3434_s24 = smov (!%p616_p9), 104   ;;  %s4143_s22 = smov (!%p616_p9), 64  }
  0x21   : > { %v3268_v0 = vld [vmem:[%s4164_s27] sm:$0xff] (!%p616_p9)   ;;  %v3269_v2 = vld [vmem:[%s4164_s27 + $0x8] sm:$0xff] (!%p616_p9)   ;;  %v3270_v3 = vld [vmem:[%s4164_s27 + $0x10] sm:$0xff] (!%p616_p9)   ;;  %s4141_s2 = smov (!%p616_p9), 16  }
  0x22   : > { %791 = vmatpush1.bf16.msra.mxu0 (!%p616_p9), %v3268_v0  ;;  %v3271_v4 = vld [vmem:[%s4164_s27 + $0x18] sm:$0xff] (!%p616_p9)   ;;  %v3272_v5 = vld [vmem:[%s4164_s27 + $0x20] sm:$0xff] (!%p616_p9)   ;;  %v3273_v8 = vld [vmem:[%s4164_s27 + $0x28] sm:$0xff] (!%p616_p9)  }
  0x23   : > { %792 = vmatprep.subr.bf16.mxu0 %v3429_v1  ;;  %s677_s5 = scalar_select %p676_p10, %s3578_s4, 1  ;;  %v3274_v9 = vld [vmem:[%s4164_s27 + $0x30] sm:$0xff]   ;;  %v3275_v10 = vld [vmem:[%s4164_s27 + $0x38] sm:$0xff]   ;;  %v3276_v11 = vld [vmem:[%s4164_s27 + $0x40] sm:$0xff]  }
  0x24   : > { %v3277_v12 = vld [vmem:[%s4164_s27 + $0x48] sm:$0xff]   ;;  %v3278_v13 = vld [vmem:[%s4164_s27 + $0x50] sm:$0xff]   ;;  %v3279_v14 = vld [vmem:[%s4164_s27 + $0x58] sm:$0xff]  }
  0x25   : > { %s2945_s23 = sshll.u32 %s677_s5, 3  ;;  %v707_v16 = vld [vmem:[%s4166_s30] sm:$0x1f]  ;;  %s4167_s5 = sld [smem:[#allocation14_spill]]  ;;  %v3283_v45 = vld [vmem:[%s4169_s7 + $0x8] sm:$0xff]  }
  0x26   : > { %793 = vmatpush1.bf16.msra.mxu0 %v3269_v2  ;;  %s680_s3 = scalar_lea.vmem %s4165_s25, %s2945_s23  ;;  %v2832_v34 = vld [vmem:[%s4168_s0] ss:$0 sm:$0xff]  ;;  %s4170_s25 = sld [smem:[#allocation16_spill]] }
  0x27   : > { %794 = vmatprep.subr.bf16.mxu0 %v3429_v1  ;;  %v682_v6 = vld [vmem:[%s680_s3] sm:$0x77]  ;;  %s4145_s23 = smov 96   ;;  %s4140_s3 = smov 24  }
  0x28   : > { %v2817_v7 = vcombine.high %v682_v6, %v682_v6  ;;  %v2816_v15 = vcombine.low %v682_v6, %v682_v6  ;;  %v3282_v43 = vld [vmem:[%s4169_s7] sm:$0xff]   ;;  %s4174_s30 = smov 8  }
  0x29   : > { %3020 = vmatpush3.bf16.msra.mxu1 %v3282_v43  ;;  %v2834_v52 = vld [vmem:[%s4171_s26] ss:$0 sm:$0xff] }
  0x2a   : > { %795 = vmatpush1.bf16.msra.mxu0 %v3270_v3  ;;  %2830 = vmatprep.mubr.msk.bf16.mxu0 %vm786_vm0, %v2817_v7 }
  0x2b   : > { %796 = vmatprep.subr.bf16.mxu0 %v3429_v1  ;;  %v2831_v32 = vld [vmem:[%s4167_s5] ss:$0 sm:$0xff]  ;;  %3021 = vmatprep.subr.bf16.mxu1 %v3430_v44  ;;  %s4142_s5 = smov 8  }
  0x2c   : > { %v2833_v50 = vld [vmem:[%s4170_s25] ss:$0 sm:$0xff] }
  0x2d   : > { %3022 = vmatpush3.bf16.msra.mxu1 %v3283_v45 }
  0x2e   : > { %797 = vmatpush1.bf16.msra.mxu0 %v3271_v4  ;;  %3027 = vmatprep.subr.bf16.mxu1 %v3430_v44 }
  0x2f   : > { %798 = vmatprep.subr.bf16.mxu0 %v3429_v1 }
  0x32   : > { %799 = vmatpush1.bf16.msra.mxu0 %v3272_v5 }
  0x33   : > { %800 = vmatprep.subr.bf16.mxu0 %v3429_v1 }
  0x36   : > { %801 = vmatpush1.bf16.msra.mxu0 %v3273_v8 }
  0x37   : > { %802 = vmatprep.subr.bf16.mxu0 %v3429_v1 }
  0x3a   : > { %803 = vmatpush1.bf16.msra.mxu0 %v3274_v9 }
  0x3b   : > { %804 = vmatprep.subr.bf16.mxu0 %v3429_v1 }
  0x3e   : > { %805 = vmatpush1.bf16.msra.mxu0 %v3275_v10 }
  0x3f   : > { %806 = vmatprep.subr.bf16.mxu0 %v3429_v1 }
  0x42   : > { %807 = vmatpush1.bf16.msra.mxu0 %v3276_v11 }
  0x43   : > { %808 = vmatprep.subr.bf16.mxu0 %v3429_v1 }
  0x46   : > { %809 = vmatpush1.bf16.msra.mxu0 %v3277_v12 }
  0x47   : > { %810 = vmatprep.subr.bf16.mxu0 %v3429_v1 }
  0x4a   : > { %811 = vmatpush1.bf16.msra.mxu0 %v3278_v13 }
  0x4b   : > { %812 = vmatprep.subr.bf16.mxu0 %v3429_v1 }
  0x4e   : > { %813 = vmatpush1.bf16.msra.mxu0 %v3279_v14 }
  0x4f   : > { %3069 = vmatprep.subr.bf16.mxu0 %v3430_v44 }
  0x51   : > { %823 = vmatmul.mubr.bf16.vlgmr.msra.gmra.mrb[0].mxu0 %v2816_v15 }
  0x52   : > { %3071 = vmatprep.mubr.msk.bf16.mxu0 %vm3431_vm2, %v3430_v44 }
 0x124   : > { %v824_v17 = vpop.f32.mrb[0].mxu0 }
 0x125   : > { %v825_v18 = vadd.f32 %v824_v17, %v707_v16  ;;  %v826_v19 = vpop.f32.mrb[1].mxu0 }
 0x126   : > { %v827_v20 = vpop.f32.mrb[2].mxu0 }
 0x127   : > { %v828_v21 = vpop.f32.mrb[3].mxu0  ;;  %v833_v22 = vsel %vm832_vm1, %v825_v18, 0.0 }
 0x128   : > { %834 = vadd.xlane.f32.xlu0 %v833_v22 }
 0x1b5   : > { %v835_v23 = vpop.xlane.xlu0 %834 }
 0x1b6   : > { %v837_v24 = vmul.f32 0.03125, %v835_v23 }
 0x1b8   : > { %v838_v25 = vsub.f32 %v825_v18, %v837_v24 }
 0x1ba   : > { %v839_v26 = vmul.f32 %v838_v25, %v838_v25 }
 0x1bc   : > { %v840_v27 = vsel %vm832_vm1, %v839_v26, 0.0 }
 0x1bd   : > { %841 = vadd.xlane.f32.xlu0 %v840_v27 }
 0x24a   : > { %v842_v28 = vpop.xlane.xlu0 %841 }
 0x24b   : > { %v843_v29 = vmul.f32 0.03125, %v842_v28 }
 0x24d   : > { %v844_v30 = vadd.f32 1e-05, %v843_v29 }
 0x24f   : > { %3313 = vrsqrt.f32 %v844_v30 }
 0x259   : > { %v3314_v31 = vpop.eup %3313 }
 0x25a   : > { %v846_v33 = vmul.f32 %v3314_v31, %v838_v25 }
 0x25c   : > { %v853_v35 = vmul.f32 %v2831_v32, %v846_v33 }
 0x25e   : > { %v3657_v36 = vadd.f32 %v2832_v34, %v853_v35 }
 0x260   : > { %v863_v37 = vsel %vm832_vm1, %v3657_v36, 0.0 }
 0x261   : > { %864 = vadd.xlane.f32.xlu1 %v863_v37 }
 0x2ee   : > { %v865_v38 = vpop.xlane.xlu1 %864 }
 0x2ef   : > { %v866_v39 = vmul.f32 0.03125, %v865_v38 }
 0x2f1   : > { %v867_v40 = vsub.f32 %v3657_v36, %v866_v39 }
 0x2f3   : > { %v868_v41 = vmul.f32 %v867_v40, %v867_v40 }
 0x2f5   : > { %v869_v42 = vsel %vm832_vm1, %v868_v41, 0.0 }
 0x2f6   : > { %870 = vadd.xlane.f32.xlu1 %v869_v42 }
 0x383   : > { %v871_v46 = vpop.xlane.xlu1 %870 }
 0x384   : > { %v872_v47 = vmul.f32 0.03125, %v871_v46 }
 0x386   : > { %v873_v48 = vadd.f32 1e-05, %v872_v47 }
 0x388   : > { %3315 = vrsqrt.f32 %v873_v48 }
 0x392   : > { %v3316_v49 = vpop.eup %3315 }
 0x393   : > { %v875_v51 = vmul.f32 %v3316_v49, %v867_v40 }
 0x395   : > { %v882_v53 = vmul.f32 %v2833_v50, %v875_v51 }
 0x397   : > { %v889_v54 = vadd.f32 %v2834_v52, %v882_v53 }
 0x399   : > { %v894_v55 = vpack.c.bf16 %v889_v54, %v889_v54 }
 0x39b   : > { %3024 = vmatmul.mubr.msk.bf16.vlgmr.msra.gmra.mrb[0].mxu1 %vm914_vm3, %v894_v55 }
 0x39c   : > { %3029 = vmatprep.mubr.msk.bf16.mxu1 %vm3431_vm2, %v3430_v44 }
 0x46e   : > { %v952_v57 = vpop.f32.mrb[0].mxu1 }
 0x46f   : > { %v953_v58 = vadd.f32 %v2835_v56, %v952_v57  ;;  %v3025_v59 = vpop.f32.mrb[1].mxu1 }
 0x470   : > { %v955_v60 = vpop.f32.mrb[2].mxu1 }
 0x471   : > { %973 = vrot.lane.b32.xlu1 %v953_v58, %s3432_s1  ;;  %970 = vrot.lane.b32.xlu0 %v953_v58, %s3433_s29  ;;  %v3026_v61 = vpop.f32.mrb[3].mxu1  ;;  %v3692_v62 = vpack.c.bf16 %v953_v58, %v953_v58  ;;  %v958_v63 = vmul.f32 0.35355338, %v953_v58 }
 0x473   : > { %v979_v8 = vpack.c.bf16 %v958_v63, %v958_v63 }
 0x475   : > { %976 = vrot.lane.b32.xlu1 %v953_v58, %s3434_s24 }
 0x479   : > { %988 = vrot.lane.b32.xlu1 %v3692_v62, %s4145_s23 }
 0x47d   : > { %960 = vrot.lane.b32.xlu1 %v958_v63, %s3433_s29 }
 0x481   : > { %963 = vrot.lane.b32.xlu1 %v958_v63, %s3432_s1 }
 0x485   : > { %966 = vrot.lane.b32.xlu1 %v958_v63, %s3434_s24 }
 0x4e3   : > { %v974_v0 = vpop.permute.xlu1 %973  ;;  %v971_v1 = vpop.permute.xlu0 %970 }
 0x4e4   : > { %v3699_v2 = vpack.c.bf16 %v971_v1, %v971_v1  ;;  %v3703_v4 = vpack.c.bf16 %v974_v0, %v974_v0 }
 0x4e6   : > { %1038 = vrot.lane.b32.xlu0 %v3699_v2, %s4145_s23 }
 0x4e7   : > { %v977_v3 = vpop.permute.xlu1 %976 }
 0x4e8   : > { %v3707_v6 = vpack.c.bf16 %v977_v3, %v977_v3 }
 0x4ea   : > { %1087 = vrot.lane.b32.xlu0 %v3703_v4, %s4145_s23 }
 0x4eb   : > { %v989_v5 = vpop.permute.xlu1 %988 }
 0x4ec   : > { %v995_v7 = vsel %vm990_vm4, %v989_v5, 0 }
 0x4ed   : > { %3028 = vmatpush3.bf16.xpose.msra.mxu1 %v995_v7 }
 0x4ee   : > { %1136 = vrot.lane.b32.xlu0 %v3707_v6, %s4145_s23  ;;  %3033 = vmatprep.subr.bf16.mxu1 %v3430_v44  ;;  %s4175_s23 = smov 16  }
 0x4ef   : > { %v961_v11 = vpop.permute.xlu1 %960 }
 0x4f0   : > { %v980_v13 = vpack.c.bf16 %v961_v11, %v961_v11 }
 0x4f3   : > { %v964_v15 = vpop.permute.xlu1 %963 }
 0x4f4   : > { %3030 = vmatmul.mubr.msk.bf16.vlgmr.msra.gmra.mrb[4].mxu1 %vm990_vm4, %v979_v8  ;;  %v981_v17 = vpack.c.bf16 %v964_v15, %v964_v15 }
 0x4f5   : > { %3035 = vmatprep.mubr.msk.bf16.mxu1 %vm3431_vm2, %v3430_v44 }
 0x4f7   : > { %v967_v19 = vpop.permute.xlu1 %966 }
 0x4f8   : > { %v982_v20 = vpack.c.bf16 %v967_v19, %v967_v19 }
 0x558   : > { %v1039_v9 = vpop.permute.xlu0 %1038 }
 0x559   : > { %v1044_v10 = vsel %vm990_vm4, %v1039_v9, 0 }
 0x55a   : > { %3034 = vmatpush3.bf16.xpose.msra.mxu1 %v1044_v10 }
 0x55b   : > { %3039 = vmatprep.subr.bf16.mxu1 %v3430_v44 }
 0x55c   : > { %v1088_v12 = vpop.permute.xlu0 %1087 }
 0x55d   : > { %v1093_v14 = vsel %vm990_vm4, %v1088_v12, 0 }
 0x560   : > { %v1137_v16 = vpop.permute.xlu0 %1136 }
 0x561   : > { %3036 = vmatmul.mubr.msk.bf16.vlgmr.msra.gmra.mrb[8].mxu1 %vm990_vm4, %v980_v13  ;;  %v1142_v18 = vsel %vm990_vm4, %v1137_v16, 0 }
 0x562   : > { %3040 = vmatpush3.bf16.xpose.msra.mxu1 %v1093_v14  ;;  %3041 = vmatprep.mubr.msk.bf16.mxu1 %vm3431_vm2, %v3430_v44 }
 0x563   : > { %3045 = vmatprep.subr.bf16.mxu1 %v3430_v44 }
 0x569   : > { %3042 = vmatmul.mubr.msk.bf16.vlgmr.msra.gmra.mrb[12].mxu1 %vm990_vm4, %v981_v17 }
 0x56a   : > { %3046 = vmatpush3.bf16.xpose.msra.mxu1 %v1142_v18  ;;  %3047 = vmatprep.mubr.msk.bf16.mxu1 %vm3431_vm2, %v3430_v44 }
 0x56b   : > { %3051 = vmatprep.subr.bf16.mxu1 %v3430_v44 }
 0x571   : > { %3048 = vmatmul.mubr.msk.bf16.vlgmr.msra.gmra.mrb[16].mxu1 %vm990_vm4, %v982_v20 }
 0x572   : > { %3053 = vmatprep.mubr.msk.bf16.mxu1 %vm3431_vm2, %v3430_v44 }
 0x5c7   : > { %v1031_v21 = vpop.f32.mrb[4].mxu1 }
 0x5c8   : > { %v3031_v22 = vpop.f32.mrb[5].mxu1  ;;  %v1185_v23 = vsel %vm1184_vm5, %v1031_v21, -inf }
 0x5c9   : > { %1186 = vmax.xlane.f32.xlu0 %v1185_v23  ;;  %v1034_v24 = vpop.f32.mrb[6].mxu1 }
 0x5ca   : > { %v3032_v25 = vpop.f32.mrb[7].mxu1 }
 0x634   : > { %v1080_v26 = vpop.f32.mrb[8].mxu1 }
 0x635   : > { %v3037_v27 = vpop.f32.mrb[9].mxu1  ;;  %v1188_v28 = vsel %vm1184_vm5, %v1080_v26, -inf }
 0x636   : > { %1189 = vmax.xlane.f32.xlu1 %v1188_v28  ;;  %v1083_v29 = vpop.f32.mrb[10].mxu1 }
 0x637   : > { %v3038_v30 = vpop.f32.mrb[11].mxu1 }
 0x638   : > { %v3284_v30 = vld [vmem:[%s4116_s9] sm:$0xff]  }
 0x63c   : > { %v1129_v31 = vpop.f32.mrb[12].mxu1 }
 0x63d   : > { %v3043_v32 = vpop.f32.mrb[13].mxu1  ;;  %v1191_v33 = vsel %vm1184_vm5, %v1129_v31, -inf }
 0x63e   : > { %1192 = vmax.xlane.f32.xlu0 %v1191_v33  ;;  %v1132_v34 = vpop.f32.mrb[14].mxu1 }
 0x63f   : > { %v3044_v35 = vpop.f32.mrb[15].mxu1 }
 0x644   : > { %v1178_v37 = vpop.f32.mrb[16].mxu1 }
 0x645   : > { %v3049_v38 = vpop.f32.mrb[17].mxu1  ;;  %v1194_v39 = vsel %vm1184_vm5, %v1178_v37, -inf }
 0x646   : > { %1195 = vmax.xlane.f32.xlu0 %v1194_v39  ;;  %v1181_v40 = vpop.f32.mrb[18].mxu1 }
 0x647   : > { %v3050_v41 = vpop.f32.mrb[19].mxu1  ;;  %v3285_v40 = vld [vmem:[%s4116_s9 + $0x8] sm:$0xff]  }
 0x656   : > { %v1187_v42 = vpop.xlane.xlu0 %1186 }
 0x657   : > { %v1197_v43 = vsub.f32 %v1031_v21, %v1187_v42 }
 0x659   : > { %v1201_v45 = vmul.f32 1.442695, %v1197_v43 }
 0x65b   : > { %3317 = vpow2.f32 %v1201_v45 }
 0x665   : > { %v3318_v46 = vpop.eup %3317 }
 0x666   : > { %v1209_v47 = vsel %vm1184_vm5, %v3318_v46, 0.0 }
 0x667   : > { %1210 = vadd.xlane.f32.xlu0 %v1209_v47 }
 0x6c3   : > { %v1190_v48 = vpop.xlane.xlu1 %1189 }
 0x6c4   : > { %v1198_v49 = vsub.f32 %v1080_v26, %v1190_v48 }
 0x6c6   : > { %v1203_v50 = vmul.f32 1.442695, %v1198_v49 }
 0x6c8   : > { %3319 = vpow2.f32 %v1203_v50 }
 0x6cb   : > { %v1193_v51 = vpop.xlane.xlu0 %1192 }
 0x6cc   : > { %v1199_v52 = vsub.f32 %v1129_v31, %v1193_v51 }
 0x6ce   : > { %v1205_v53 = vmul.f32 1.442695, %v1199_v52 }
 0x6d0   : > { %3321 = vpow2.f32 %v1205_v53 }
 0x6d2   : > { %v3320_v54 = vpop.eup %3319 }
 0x6d3   : > { %v1212_v55 = vsel %vm1184_vm5, %v3320_v54, 0.0  ;;  %v1196_v58 = vpop.xlane.xlu0 %1195 }
 0x6d4   : > { %1213 = vadd.xlane.f32.xlu1 %v1212_v55  ;;  %v1200_v59 = vsub.f32 %v1178_v37, %v1196_v58 }
 0x6d6   : > { %v1207_v60 = vmul.f32 1.442695, %v1200_v59 }
 0x6d8   : > { %3323 = vpow2.f32 %v1207_v60 }
 0x6da   : > { %v3322_v56 = vpop.eup %3321 }
 0x6db   : > { %v1215_v57 = vsel %vm1184_vm5, %v3322_v56, 0.0 }
 0x6dc   : > { %1216 = vadd.xlane.f32.xlu0 %v1215_v57 }
 0x6e2   : > { %v3324_v61 = vpop.eup %3323 }
 0x6e3   : > { %v1218_v63 = vsel %vm1184_vm5, %v3324_v61, 0.0 }
 0x6e5   : > { %1286 = vrot.lane.b32.xlu1 %v3699_v2, %s4143_s22 }
 0x6e9   : > { %1334 = vrot.lane.b32.xlu1 %v3703_v4, %s4143_s22 }
 0x6f2   : > { %1233 = vrot.lane.b32.xlu0 %v3692_v62, %s4143_s22  ;;  %v3437_v62 = vmov 65535  }
 0x6f3   : > { %v1241_v4 = vsel %vm1239_vm6, 4294967295, %v3437_v62 }
 0x6f4   : > { %v1211_v0 = vpop.xlane.xlu0 %1210  ;;  %v3747_v7 = vsel %vm1240_vm7, %v1241_v4, 0 }
 0x6f5   : > { %3325 = vrcp.f32 %v1211_v0 }
 0x6ff   : > { %v3326_v3 = vpop.eup %3325 }
 0x700   : > { %v1225_v5 = vmul.f32 %v3326_v3, %v3318_v46  ;;  %v3287_v3 = vld [vmem:[%s4120_s13 + $0x8] sm:$0xff]  }
 0x70d   : > { %1219 = vadd.xlane.f32.xlu1 %v1218_v63 }
 0x71e   : > { %1382 = vrot.lane.b32.xlu1 %v3707_v6, %s4143_s22  ;;  %v1229_v6 = vpack.c.bf16 %v1225_v5, %v1225_v5  ;;  %s4172_s22 = smov 96  }
 0x761   : > { %v1214_v1 = vpop.xlane.xlu1 %1213 }
 0x762   : > { %3327 = vrcp.f32 %v1214_v1 }
 0x765   : > { %v1287_v10 = vpop.permute.xlu1 %1286 }
 0x766   : > { %v1292_v12 = vand.u32 %v1287_v10, %v3747_v7 }
 0x769   : > { %v1217_v2 = vpop.xlane.xlu0 %1216  ;;  %v1335_v14 = vpop.permute.xlu1 %1334 }
 0x76a   : > { %3329 = vrcp.f32 %v1217_v2  ;;  %v1340_v17 = vand.u32 %v1335_v14, %v3747_v7  ;;  %v3288_v14 = vld [vmem:[%s4122_s15] sm:$0xff]  }
 0x76c   : > { %v3328_v11 = vpop.eup %3327 }
 0x76d   : > { %v1234_v8 = vpop.permute.xlu0 %1233  ;;  %v1226_v13 = vmul.f32 %v3328_v11, %v3320_v54  ;;  %v2850_v54 = vld [vmem:[%s4117_s10] ss:$0 sm:$0xff] }
 0x76e   : > { %v1244_v9 = vand.u32 %v3747_v7, %v1234_v8 }
 0x76f   : > { %v1230_v15 = vpack.c.bf16 %v1226_v13, %v1226_v13 }
 0x770   : > { %3052 = vmatpush3.bf16.msra.mxu1 %v1244_v9  ;;  %v2851_v9 = vld [vmem:[%s4118_s11] ss:$0 sm:$0xff] }
 0x771   : > { %3057 = vmatprep.subr.bf16.mxu1 %v3430_v44 }
 0x773   : > { %3054 = vmatmul.mubr.msk.bf16.vlgmr.msra.gmra.mrb[20].mxu1 %vm1235_vm8, %v1229_v6  ;;  %v2852_v6 = vld [vmem:[%s4119_s12] ss:$0 sm:$0xff] }
 0x774   : > { %3058 = vmatpush3.bf16.msra.mxu1 %v1292_v12  ;;  %3059 = vmatprep.mubr.msk.bf16.mxu1 %vm3431_vm2, %v3430_v44  ;;  %v3330_v16 = vpop.eup %3329 }
 0x775   : > { %3063 = vmatprep.subr.bf16.mxu1 %v3430_v44  ;;  %v1227_v18 = vmul.f32 %v3330_v16, %v3322_v56  ;;  %v3290_v16 = vld [vmem:[%s4122_s15 + $0x10] sm:$0xff]  }
 0x777   : > { %v1231_v19 = vpack.c.bf16 %v1227_v18, %v1227_v18  ;;  %v3292_v18 = vld [vmem:[%s4122_s15 + $0x20] sm:$0xff]  }
 0x77b   : > { %3060 = vmatmul.mubr.msk.bf16.vlgmr.msra.gmra.mrb[24].mxu1 %vm1235_vm8, %v1230_v15  ;;  %v3289_v15 = vld [vmem:[%s4122_s15 + $0x8] sm:$0xff]  }
 0x77c   : > { %3064 = vmatpush3.bf16.msra.mxu1 %v1340_v17  ;;  %3065 = vmatprep.mubr.msk.bf16.mxu1 %vm3431_vm2, %v3430_v44  ;;  %v3291_v17 = vld [vmem:[%s4122_s15 + $0x18] sm:$0xff]  }
 0x77d   : > { %3075 = vmatprep.subr.bf16.mxu1 %v3430_v44 }
 0x783   : > { %3066 = vmatmul.mubr.msk.bf16.vlgmr.msra.gmra.mrb[28].mxu1 %vm1235_vm8, %v1231_v19  ;;  %v3293_v19 = vld [vmem:[%s4122_s15 + $0x28] sm:$0xff]  }
 0x784   : > { %3079 = vmatprep.mubr.msk.bf16.mxu1 %vm3431_vm2, %v3430_v44  ;;  %3076 = vmatpush3.bf16.msra.mxu1 %v3284_v30 }
 0x785   : > { %3077 = vmatprep.subr.bf16.mxu1 %v3430_v44 }
 0x788   : > { %3078 = vmatpush3.bf16.msra.mxu1 %v3285_v40 }
 0x789   : > { %3091 = vmatprep.subr.bf16.mxu1 %v3430_v44 }
 0x79a   : > { %v1220_v20 = vpop.xlane.xlu1 %1219 }
 0x79b   : > { %3331 = vrcp.f32 %v1220_v20  ;;  %v3294_v20 = vld [vmem:[%s4122_s15 + $0x30] sm:$0xff]  }
 0x79e   : > { %v1383_v21 = vpop.permute.xlu1 %1382 }
 0x79f   : > { %v1388_v22 = vand.u32 %v1383_v21, %v3747_v7  ;;  %v3295_v21 = vld [vmem:[%s4122_s15 + $0x38] sm:$0xff]  }
 0x7a1   : > { %3070 = vmatpush3.bf16.msra.mxu0 %v1388_v22  ;;  %v2853_v22 = vld [vmem:[%s4121_s14] ss:$0 sm:$0xff] }
 0x7a2   : > { %3083 = vmatprep.subr.bf16.mxu0 %v3430_v44 }
 0x7a5   : > { %v3332_v23 = vpop.eup %3331 }
 0x7a6   : > { %v1228_v24 = vmul.f32 %v3332_v23, %v3324_v61 }
 0x7a8   : > { %v1232_v25 = vpack.c.bf16 %v1228_v24, %v1228_v24 }
 0x7aa   : > { %3072 = vmatmul.mubr.msk.bf16.vlgmr.msra.gmra.mrb[4].mxu0 %vm1235_vm8, %v1232_v25 }
 0x7ab   : > { %3087 = vmatprep.mubr.msk.bf16.mxu0 %vm3431_vm2, %v3430_v44 }
 0x846   : > { %v1280_v26 = vpop.f32.mrb[20].mxu1 }
 0x847   : > { %v3055_v27 = vpop.f32.mrb[21].mxu1 }
 0x848   : > { %v1283_v28 = vpop.f32.mrb[22].mxu1 }
 0x849   : > { %v3056_v29 = vpop.f32.mrb[23].mxu1 }
 0x84e   : > { %v1328_v31 = vpop.f32.mrb[24].mxu1 }
 0x84f   : > { %1431 = vrot.lane.b32.xlu0 %v1328_v31, %s4142_s5  ;;  %v3061_v32 = vpop.f32.mrb[25].mxu1 }
 0x850   : > { %v1331_v33 = vpop.f32.mrb[26].mxu1 }
 0x851   : > { %v3062_v34 = vpop.f32.mrb[27].mxu1 }
 0x856   : > { %v1376_v35 = vpop.f32.mrb[28].mxu1 }
 0x857   : > { %1435 = vrot.lane.b32.xlu1 %v1376_v35, %s4141_s2  ;;  %v3067_v37 = vpop.f32.mrb[29].mxu1  ;;  %s4176_s2 = smov 24  }
 0x858   : > { %v1379_v38 = vpop.f32.mrb[30].mxu1  ;;  %v2866_v37 = vld [vmem:[%s4123_s16] ss:$0 sm:$0xff] }
 0x859   : > { %v3068_v39 = vpop.f32.mrb[31].mxu1 }
 0x87d   : > { %v1424_v41 = vpop.f32.mrb[4].mxu0 }
 0x87e   : > { %v3073_v42 = vpop.f32.mrb[5].mxu0  ;;  %1439 = vrot.lane.b32.xlu0 %v1424_v41, %s4140_s3  ;;  %s674_s3 = sand.u32 1, %s3419_s28  }
 0x87f   : > { %v1427_v43 = vpop.f32.mrb[6].mxu0 }
 0x880   : > { %v3074_v45 = vpop.f32.mrb[7].mxu0 }
 0x8c1   : > { %v1432_v46 = vpop.permute.xlu0 %1431 }
 0x8c2   : > { %v1442_v48 = vsel %vm990_vm4, %v1280_v26, %v1432_v46 }
 0x8c9   : > { %v1436_v47 = vpop.permute.xlu1 %1435 }
 0x8ca   : > { %v1444_v49 = vsel %vm1443_vm9, %v1442_v48, %v1436_v47 }
 0x8f0   : > { %v1440_v50 = vpop.permute.xlu0 %1439 }
 0x8f1   : > { %v1446_v51 = vsel %vm1445_vm10, %v1444_v49, %v1440_v50  ;;  %v3296_v50 = vld [vmem:[%s4169_s7 + $0x10] sm:$0xff]  }
 0x8f2   : > { %v1451_v52 = vpack.c.bf16 %v1446_v51, %v1446_v51  ;;  %v3297_v51 = vld [vmem:[%s4169_s7 + $0x18] sm:$0xff]  }
 0x8f4   : > { %3080 = vmatmul.mubr.msk.bf16.vlgmr.msra.gmra.mrb[32].mxu1 %vm914_vm3, %v1451_v52 }
 0x8f5   : > { %3107 = vmatprep.mubr.msk.bf16.mxu1 %vm3431_vm2, %v3430_v44  ;;  %3092 = vmatpush3.bf16.msra.mxu1 %v3288_v14 }
 0x8f6   : > { %3093 = vmatprep.subr.bf16.mxu1 %v3430_v44 }
 0x8f9   : > { %3094 = vmatpush3.bf16.msra.mxu1 %v3289_v15 }
 0x8fa   : > { %3095 = vmatprep.subr.bf16.mxu1 %v3430_v44 }
 0x8fd   : > { %3096 = vmatpush3.bf16.msra.mxu1 %v3290_v16 }
 0x8fe   : > { %3097 = vmatprep.subr.bf16.mxu1 %v3430_v44 }
 0x901   : > { %3098 = vmatpush3.bf16.msra.mxu1 %v3291_v17 }
 0x902   : > { %3099 = vmatprep.subr.bf16.mxu1 %v3430_v44 }
 0x905   : > { %3100 = vmatpush3.bf16.msra.mxu1 %v3292_v18 }
 0x906   : > { %3101 = vmatprep.subr.bf16.mxu1 %v3430_v44 }
 0x909   : > { %3102 = vmatpush3.bf16.msra.mxu1 %v3293_v19 }
 0x90a   : > { %3103 = vmatprep.subr.bf16.mxu1 %v3430_v44 }
 0x90d   : > { %3104 = vmatpush3.bf16.msra.mxu1 %v3294_v20 }
 0x90e   : > { %3105 = vmatprep.subr.bf16.mxu1 %v3430_v44 }
 0x911   : > { %3106 = vmatpush3.bf16.msra.mxu1 %v3295_v21 }
 0x912   : > { %3137 = vmatprep.subr.bf16.mxu1 %v3430_v44 }
 0x9c7   : > { %v1501_v53 = vpop.f32.mrb[32].mxu1 }
 0x9c8   : > { %v1507_v55 = vadd.f32 %v1501_v53, %v3657_v36  ;;  %v3081_v56 = vpop.f32.mrb[33].mxu1  ;;  %v3286_v36 = vld [vmem:[%s4120_s13] sm:$0xff]  }
 0x9c9   : > { %v1504_v57 = vpop.f32.mrb[34].mxu1  ;;  %3084 = vmatpush3.bf16.msra.mxu0 %v3286_v36  ;;  %v2869_v56 = vld [vmem:[%s4170_s25 + $0x1] ss:$0 sm:$0xff] }
 0x9ca   : > { %v3790_v58 = vadd.f32 %v2850_v54, %v1507_v55  ;;  %v3082_v59 = vpop.f32.mrb[35].mxu1  ;;  %3085 = vmatprep.subr.bf16.mxu0 %v3430_v44 }
 0x9cc   : > { %v1518_v60 = vsel %vm832_vm1, %v3790_v58, 0.0 }
 0x9cd   : > { %1519 = vadd.xlane.f32.xlu1 %v1518_v60  ;;  %3086 = vmatpush3.bf16.msra.mxu0 %v3287_v3 }
 0x9ce   : > { %3111 = vmatprep.subr.bf16.mxu0 %v3430_v44 }
 0xa5a   : > { %v1520_v61 = vpop.xlane.xlu1 %1519 }
 0xa5b   : > { %v1521_v63 = vmul.f32 0.03125, %v1520_v61 }
 0xa5d   : > { %v1522_v0 = vsub.f32 %v3790_v58, %v1521_v63  ;;  %v2876_v63 = vld [vmem:[%s4115_s8 + $0x1] ss:$0 sm:$0xff] }
 0xa5f   : > { %v1523_v1 = vmul.f32 %v1522_v0, %v1522_v0 }
 0xa61   : > { %v1524_v2 = vsel %vm832_vm1, %v1523_v1, 0.0 }
 0xa62   : > { %1525 = vadd.xlane.f32.xlu0 %v1524_v2 }
 0xaef   : > { %v1526_v62 = vpop.xlane.xlu0 %1525 }
 0xaf0   : > { %v1527_v4 = vmul.f32 0.03125, %v1526_v62 }
 0xaf2   : > { %v1528_v5 = vadd.f32 1e-05, %v1527_v4 }
 0xaf4   : > { %3333 = vrsqrt.f32 %v1528_v5 }
 0xafe   : > { %v3334_v8 = vpop.eup %3333 }
 0xaff   : > { %v1530_v10 = vmul.f32 %v3334_v8, %v1522_v0 }
 0xb01   : > { %v1537_v11 = vmul.f32 %v2851_v9, %v1530_v10 }
 0xb03   : > { %v1544_v12 = vadd.f32 %v2852_v6, %v1537_v11 }
 0xb05   : > { %v1549_v13 = vpack.c.bf16 %v1544_v12, %v1544_v12 }
 0xb07   : > { %3088 = vmatmul.mubr.msk.bf16.vlgmr.msra.gmra.mrb[8].mxu0 %vm914_vm3, %v1549_v13 }
 0xb08   : > { %3115 = vmatprep.mubr.msk.bf16.mxu0 %vm3431_vm2, %v3430_v44  ;;  %3112 = vmatpush3.bf16.msra.mxu0 %v3296_v50 }
 0xb09   : > { %3113 = vmatprep.subr.bf16.mxu0 %v3430_v44 }
 0xb0c   : > { %3114 = vmatpush3.bf16.msra.mxu0 %v3297_v51 }
 0xb0d   : > { %3119 = vmatprep.subr.bf16.mxu0 %v3430_v44 }
 0xbda   : > { %v1606_v23 = vpop.f32.mrb[8].mxu0 }
 0xbdb   : > { %v1607_v24 = vadd.f32 %v2853_v22, %v1606_v23  ;;  %v3089_v25 = vpop.f32.mrb[9].mxu0 }
 0xbdc   : > { %v1609_v26 = vpop.f32.mrb[10].mxu0 }
 0xbdd   : > { %v2857_v27 = vmul.f32 -1.702, %v1607_v24  ;;  %v3090_v28 = vpop.f32.mrb[11].mxu0 }
 0xbdf   : > { %v1614_v29 = vmul.f32 1.442695, %v2857_v27 }
 0xbe1   : > { %3335 = vpow2.f32 %v1614_v29 }
 0xbeb   : > { %v3336_v30 = vpop.eup %3335 }
 0xbec   : > { %v1616_v31 = vadd.f32 1.0, %v3336_v30 }
 0xbee   : > { %3337 = vrcp.f32 %v1616_v31 }
 0xbf8   : > { %v3338_v32 = vpop.eup %3337 }
 0xbf9   : > { %v1619_v33 = vmul.f32 %v3338_v32, %v1607_v24 }
 0xbfb   : > { %v1636_v34 = vpack.c.bf16 %v1619_v33, %v1619_v33 }
 0xbfd   : > { %3108 = vmatmul.mubr.bf16.vlgmr.msra.gmra.mrb[36].mxu1 %v1636_v34 }
 0xbfe   : > { %3139 = vmatprep.mubr.msk.bf16.mxu1 %vm3431_vm2, %v3430_v44 }
 0xcd0   : > { %v1719_v35 = vpop.f32.mrb[36].mxu1 }
 0xcd1   : > { %v1725_v38 = vadd.f32 %v1719_v35, %v3790_v58  ;;  %v3109_v39 = vpop.f32.mrb[37].mxu1  ;;  %v2870_v58 = vld [vmem:[%s4171_s26 + $0x1] ss:$0 sm:$0xff] }
 0xcd2   : > { %v1722_v40 = vpop.f32.mrb[38].mxu1 }
 0xcd3   : > { %v3854_v41 = vadd.f32 %v2866_v37, %v1725_v38  ;;  %v3110_v42 = vpop.f32.mrb[39].mxu1 }
 0xcd5   : > { %v1738_v43 = vsel %vm832_vm1, %v3854_v41, 0.0 }
 0xcd6   : > { %1739 = vadd.xlane.f32.xlu0 %v1738_v43 }
 0xd63   : > { %v1740_v45 = vpop.xlane.xlu0 %1739 }
 0xd64   : > { %v1741_v46 = vmul.f32 0.03125, %v1740_v45 }
 0xd66   : > { %v1742_v47 = vsub.f32 %v3854_v41, %v1741_v46 }
 0xd68   : > { %v1743_v48 = vmul.f32 %v1742_v47, %v1742_v47 }
 0xd6a   : > { %v1744_v49 = vsel %vm832_vm1, %v1743_v48, 0.0 }
 0xd6b   : > { %1745 = vadd.xlane.f32.xlu0 %v1744_v49 }
 0xdf8   : > { %v1746_v52 = vpop.xlane.xlu0 %1745 }
 0xdf9   : > { %v1747_v53 = vmul.f32 0.03125, %v1746_v52 }
 0xdfb   : > { %v1748_v54 = vadd.f32 1e-05, %v1747_v53 }
 0xdfd   : > { %3339 = vrsqrt.f32 %v1748_v54 }
 0xe07   : > { %v3340_v55 = vpop.eup %3339 }
 0xe08   : > { %v1750_v57 = vmul.f32 %v3340_v55, %v1742_v47 }
 0xe0a   : > { %v1757_v59 = vmul.f32 %v2869_v56, %v1750_v57 }
 0xe0c   : > { %v1764_v60 = vadd.f32 %v2870_v58, %v1757_v59 }
 0xe0e   : > { %v1770_v61 = vpack.c.bf16 %v1764_v60, %v1764_v60 }
 0xe10   : > { %3116 = vmatmul.mubr.msk.bf16.vlgmr.msra.gmra.mrb[12].mxu0 %vm914_vm3, %v1770_v61 }
 0xe11   : > { %3121 = vmatprep.mubr.msk.bf16.mxu0 %vm3431_vm2, %v3430_v44 }
 0xee3   : > { %v1828_v0 = vpop.f32.mrb[12].mxu0 }
 0xee4   : > { %v1829_v1 = vadd.f32 %v2876_v63, %v1828_v0  ;;  %v3117_v2 = vpop.f32.mrb[13].mxu0 }
 0xee5   : > { %v1831_v36 = vpop.f32.mrb[14].mxu0 }
 0xee6   : > { %1849 = vrot.lane.b32.xlu0 %v1829_v1, %s3432_s1  ;;  %1846 = vrot.lane.b32.xlu1 %v1829_v1, %s3433_s29  ;;  %v3118_v3 = vpop.f32.mrb[15].mxu0  ;;  %v1834_v62 = vmul.f32 0.35355338, %v1829_v1  ;;  %v1859_v4 = vpack.c.bf16 %v1829_v1, %v1829_v1 }
 0xee8   : > { %v1855_v14 = vpack.c.bf16 %v1834_v62, %v1834_v62 }
 0xeea   : > { %1852 = vrot.lane.b32.xlu1 %v1829_v1, %s3434_s24  ;;  %1836 = vrot.lane.b32.xlu0 %v1834_v62, %s3433_s29  ;;  %s2942_s29 = sshll.u32 %s3578_s4, 4  ;;  %s2743_s4 = scalar_lea.sflag [#allocation3], %s674_s3 }
 0xeee   : > { %1864 = vrot.lane.b32.xlu1 %v1859_v4, %s4172_s22 }
 0xf58   : > { %v1847_v5 = vpop.permute.xlu1 %1846  ;;  %v1850_v9 = vpop.permute.xlu0 %1849 }
 0xf59   : > { %v3885_v8 = vpack.c.bf16 %v1847_v5, %v1847_v5  ;;  %v3889_v6 = vpack.c.bf16 %v1850_v9, %v1850_v9 }
 0xf5b   : > { %1913 = vrot.lane.b32.xlu1 %v3885_v8, %s4172_s22 }
 0xf5c   : > { %v1853_v10 = vpop.permute.xlu1 %1852  ;;  %v1837_v15 = vpop.permute.xlu0 %1836 }
 0xf5d   : > { %v3891_v11 = vpack.c.bf16 %v1853_v10, %v1853_v10  ;;  %v1856_v21 = vpack.c.bf16 %v1837_v15, %v1837_v15 }
 0xf5f   : > { %1962 = vrot.lane.b32.xlu1 %v3889_v6, %s4172_s22  ;;  %2011 = vrot.lane.b32.xlu0 %v3891_v11, %s4172_s22 }
 0xf60   : > { %v1865_v12 = vpop.permute.xlu1 %1864 }
 0xf61   : > { %v1870_v13 = vsel %vm990_vm4, %v1865_v12, 0 }
 0xf62   : > { %3120 = vmatpush3.bf16.xpose.msra.mxu0 %v1870_v13 }
 0xf63   : > { %1839 = vrot.lane.b32.xlu1 %v1834_v62, %s3432_s1  ;;  %1842 = vrot.lane.b32.xlu0 %v1834_v62, %s3434_s24  ;;  %s4173_s1 = smov 64   ;;  %s675_s24 = scalar_lea.vmem [#allocation2], %s674_s3 }
 0xf64   : > { %3125 = vmatprep.subr.bf16.mxu0 %v3430_v44  ;;  %s2755_s5 = sshll.u32 %s675_s24, 4  ;;  %s4067_s5 = int_to_ptr.vmem [resolvable:$true] %s2755_s5 }
 0xf65   : > { %s3365_s22 = scalar_lea.vmem %s4067_s5, 16 }
 0xf66   : > { %p3366_p11 = scmp.ne.s32.totalorder %s4067_s5, %s3365_s22 }
 0xf68   : > { %p3367_p12 = pnand %p3366_p11, %p3595_p5 }
 0xf69   : > { %3122 = vmatmul.mubr.msk.bf16.vlgmr.msra.gmra.mrb[16].mxu0 %vm990_vm4, %v1855_v14 }
 0xf6a   : > { %3127 = vmatprep.mubr.msk.bf16.mxu0 %vm3431_vm2, %v3430_v44  ;;  %p3368_p13 = pneg %p3367_p12 }
 0xfcd   : > { %v1914_v16 = vpop.permute.xlu1 %1913 }
 0xfce   : > { %v1919_v17 = vsel %vm990_vm4, %v1914_v16, 0 }
 0xfcf   : > { %3126 = vmatpush3.bf16.xpose.msra.mxu0 %v1919_v17 }
 0xfd0   : > { %3131 = vmatprep.subr.bf16.mxu0 %v3430_v44 }
 0xfd1   : > { %v2012_v18 = vpop.permute.xlu0 %2011  ;;  %v1963_v20 = vpop.permute.xlu1 %1962 }
 0xfd2   : > { %v2017_v19 = vsel %vm990_vm4, %v2012_v18, 0  ;;  %v1968_v23 = vsel %vm990_vm4, %v1963_v20, 0 }
 0xfd3   : > { %3138 = vmatpush3.bf16.xpose.msra.mxu1 %v2017_v19 }
 0xfd4   : > { %3149 = vmatprep.subr.bf16.mxu1 %v3430_v44 }
 0xfd5   : > { %v1843_v22 = vpop.permute.xlu0 %1842  ;;  %v1840_v25 = vpop.permute.xlu1 %1839 }
 0xfd6   : > { %3128 = vmatmul.mubr.msk.bf16.vlgmr.msra.gmra.mrb[20].mxu0 %vm990_vm4, %v1856_v21  ;;  %v1858_v24 = vpack.c.bf16 %v1843_v22, %v1843_v22  ;;  %v1857_v26 = vpack.c.bf16 %v1840_v25, %v1840_v25 }
 0xfd7   : > { %3132 = vmatpush3.bf16.xpose.msra.mxu0 %v1968_v23  ;;  %3133 = vmatprep.mubr.msk.bf16.mxu0 %vm3431_vm2, %v3430_v44 }
 0xfd8   : > { %3143 = vmatprep.subr.bf16.mxu0 %v3430_v44 }
 0xfda   : > { %3140 = vmatmul.mubr.msk.bf16.vlgmr.msra.gmra.mrb[40].mxu1 %vm990_vm4, %v1858_v24 }
 0xfdb   : > { %3151 = vmatprep.mubr.msk.bf16.mxu1 %vm3431_vm2, %v3430_v44 }
 0xfde   : > { %3134 = vmatmul.mubr.msk.bf16.vlgmr.msra.gmra.mrb[24].mxu0 %vm990_vm4, %v1857_v26 }
 0xfdf   : > { %3145 = vmatprep.mubr.msk.bf16.mxu0 %vm3431_vm2, %v3430_v44 }
0x103c   : > { %v1906_v27 = vpop.f32.mrb[16].mxu0 }
0x103d   : > { %v3123_v28 = vpop.f32.mrb[17].mxu0  ;;  %v2059_v29 = vsel %vm1184_vm5, %v1906_v27, -inf }
0x103e   : > { %2060 = vmax.xlane.f32.xlu1 %v2059_v29  ;;  %v1909_v30 = vpop.f32.mrb[18].mxu0 }
0x103f   : > { %v3124_v31 = vpop.f32.mrb[19].mxu0 }
0x104f   : > { %2107 = vrot.lane.b32.xlu1 %v1859_v4, %s4173_s1 }
0x10a9   : > { %v1955_v32 = vpop.f32.mrb[20].mxu0 }
0x10aa   : > { %v3129_v33 = vpop.f32.mrb[21].mxu0  ;;  %v2062_v34 = vsel %vm1184_vm5, %v1955_v32, -inf }
0x10ab   : > { %2063 = vmax.xlane.f32.xlu0 %v2062_v34  ;;  %v1958_v35 = vpop.f32.mrb[22].mxu0  ;;  %v3298_v33 = vld [vmem:[%s4116_s9 + $0x10] sm:$0xff]   ;;  %v3299_v34 = vld [vmem:[%s4116_s9 + $0x18] sm:$0xff]  }
0x10ac   : > { %v3130_v37 = vpop.f32.mrb[23].mxu0 }
0x10ad   : > { %v2053_v38 = vpop.f32.mrb[40].mxu1 }
0x10ae   : > { %v3141_v39 = vpop.f32.mrb[41].mxu1  ;;  %v2068_v49 = vsel %vm1184_vm5, %v2053_v38, -inf }
0x10af   : > { %v2056_v40 = vpop.f32.mrb[42].mxu1 }
0x10b0   : > { %v3142_v42 = vpop.f32.mrb[43].mxu1 }
0x10b1   : > { %v2004_v43 = vpop.f32.mrb[24].mxu0 }
0x10b2   : > { %v3135_v45 = vpop.f32.mrb[25].mxu0  ;;  %v2065_v46 = vsel %vm1184_vm5, %v2004_v43, -inf }
0x10b3   : > { %2066 = vmax.xlane.f32.xlu0 %v2065_v46  ;;  %v2007_v47 = vpop.f32.mrb[26].mxu0 }
0x10b4   : > { %v3136_v48 = vpop.f32.mrb[27].mxu0 }
0x10b7   : > { %2069 = vmax.xlane.f32.xlu0 %v2068_v49 }
0x10cb   : > { %v2061_v50 = vpop.xlane.xlu1 %2060 }
0x10cc   : > { %v2071_v51 = vsub.f32 %v1906_v27, %v2061_v50 }
0x10ce   : > { %v2075_v52 = vmul.f32 1.442695, %v2071_v51 }
0x10cf   : > { %v2108_v53 = vpop.permute.xlu1 %2107 }
0x10d0   : > { %3341 = vpow2.f32 %v2075_v52  ;;  %v2113_v54 = vand.u32 %v2108_v53, %v3747_v7 }
0x10d2   : > { %3144 = vmatpush3.bf16.msra.mxu0 %v2113_v54 }
0x10d3   : > { %3155 = vmatprep.subr.bf16.mxu0 %v3430_v44 }
0x10da   : > { %v3342_v55 = vpop.eup %3341 }
0x10db   : > { %v2083_v56 = vsel %vm1184_vm5, %v3342_v55, 0.0 }
0x10dc   : > { %2084 = vadd.xlane.f32.xlu1 %v2083_v56 }
0x10ed   : > { %2203 = vrot.lane.b32.xlu1 %v3889_v6, %s4173_s1 }
0x1138   : > { %v2064_v57 = vpop.xlane.xlu0 %2063 }
0x1139   : > { %v2072_v58 = vsub.f32 %v1955_v32, %v2064_v57 }
0x113b   : > { %v2077_v59 = vmul.f32 1.442695, %v2072_v58  ;;  %v2896_v58 = vld [vmem:[%s4117_s10 + $0x1] ss:$0 sm:$0xff] }
0x113d   : > { %3343 = vpow2.f32 %v2077_v59 }
0x1140   : > { %v2067_v60 = vpop.xlane.xlu0 %2066 }
0x1141   : > { %v2073_v61 = vsub.f32 %v2004_v43, %v2067_v60 }
0x1143   : > { %v2079_v63 = vmul.f32 1.442695, %v2073_v61 }
0x1144   : > { %v2070_v0 = vpop.xlane.xlu0 %2069 }
0x1145   : > { %3345 = vpow2.f32 %v2079_v63  ;;  %v2074_v1 = vsub.f32 %v2053_v38, %v2070_v0 }
0x1147   : > { %v3344_v2 = vpop.eup %3343  ;;  %v2081_v36 = vmul.f32 1.442695, %v2074_v1 }
0x1148   : > { %v2086_v3 = vsel %vm1184_vm5, %v3344_v2, 0.0 }
0x1149   : > { %3347 = vpow2.f32 %v2081_v36  ;;  %2087 = vadd.xlane.f32.xlu0 %v2086_v3 }
0x114f   : > { %v3346_v62 = vpop.eup %3345 }
0x1150   : > { %v2089_v4 = vsel %vm1184_vm5, %v3346_v62, 0.0 }
0x1151   : > { %2090 = vadd.xlane.f32.xlu1 %v2089_v4 }
0x1153   : > { %v3348_v5 = vpop.eup %3347 }
0x1154   : > { %v2092_v9 = vsel %vm1184_vm5, %v3348_v5, 0.0 }
0x1155   : > { %2093 = vadd.xlane.f32.xlu0 %v2092_v9 }
0x1162   : > { %2251 = vrot.lane.b32.xlu1 %v3891_v11, %s4173_s1 }
0x1169   : > { %v2085_v10 = vpop.xlane.xlu1 %2084 }
0x116a   : > { %3349 = vrcp.f32 %v2085_v10 }
0x116b   : > { %2155 = vrot.lane.b32.xlu0 %v3885_v8, %s4173_s1  ;;  %s3441_s1 = smov [#allocation2]  }
0x116c   : > { %s3369_s7 = sshll.u32 %s3441_s1, 4  ;;  %s3370_s7 = int_to_ptr.vmem [resolvable:$false] %s3369_s7 }
0x116d   : > { %v2204_v13 = vpop.permute.xlu1 %2203  ;;  %s3371_s0 = scalar_lea.vmem %s3370_s7, 32  ;;  %p3372_p0 = scmp.lt.s32.totalorder %s4067_s5, %s3370_s7 }
0x116e   : > { %v2209_v15 = vand.u32 %v2204_v13, %v3747_v7  ;;  %v2899_v13 = vld [vmem:[%s4118_s11 + $0x1] ss:$0 sm:$0xff]  ;;  %p3373_p1 = scmp.lt.s32.totalorder %s3371_s0, %s3365_s22 }
0x1170   : > { %p3374_p2 = por %p3373_p1, %p3372_p0 }
0x1172   : > { %p3375_p3 = pnand %p3374_p2, %p3368_p13 }
0x1174   : > { %v3350_v6 = vpop.eup %3349 }
0x1175   : > { %v2099_v12 = vmul.f32 %v3350_v6, %v3342_v55 }
0x1177   : > { %v2103_v14 = vpack.c.bf16 %v2099_v12, %v2099_v12 }
0x1179   : > { %3146 = vmatmul.mubr.msk.bf16.vlgmr.msra.gmra.mrb[28].mxu0 %vm1235_vm8, %v2103_v14 }
0x117a   : > { %3156 = vmatpush3.bf16.msra.mxu0 %v2209_v15  ;;  %3157 = vmatprep.mubr.msk.bf16.mxu0 %vm3431_vm2, %v3430_v44  ;;  %v2900_v15 = vld [vmem:[%s4119_s12 + $0x1] ss:$0 sm:$0xff] }
0x117b   : > { %3167 = vmatprep.subr.bf16.mxu0 %v3430_v44 }
0x11d6   : > { %v2088_v11 = vpop.xlane.xlu0 %2087 }
0x11d7   : > { %3351 = vrcp.f32 %v2088_v11 }
0x11de   : > { %v2091_v16 = vpop.xlane.xlu1 %2090 }
0x11df   : > { %3353 = vrcp.f32 %v2091_v16 }
0x11e1   : > { %v3352_v8 = vpop.eup %3351 }
0x11e2   : > { %v2094_v17 = vpop.xlane.xlu0 %2093  ;;  %v2100_v18 = vmul.f32 %v3352_v8, %v3344_v2  ;;  %v2252_v21 = vpop.permute.xlu1 %2251  ;;  %v3302_v8 = vld [vmem:[%s4122_s15 + $0x40] sm:$0xff]  }
0x11e3   : > { %3355 = vrcp.f32 %v2094_v17  ;;  %v2257_v25 = vand.u32 %v2252_v21, %v3747_v7  ;;  %v3306_v21 = vld [vmem:[%s4122_s15 + $0x60] sm:$0xff]  }
0x11e4   : > { %v2104_v24 = vpack.c.bf16 %v2100_v18, %v2100_v18  ;;  %v3303_v18 = vld [vmem:[%s4122_s15 + $0x48] sm:$0xff]  }
0x11e6   : > { %v2156_v19 = vpop.permute.xlu0 %2155 }
0x11e7   : > { %v2161_v20 = vand.u32 %v2156_v19, %v3747_v7  ;;  %v3304_v19 = vld [vmem:[%s4122_s15 + $0x50] sm:$0xff]  }
0x11e9   : > { %v3354_v22 = vpop.eup %3353  ;;  %3150 = vmatpush3.bf16.msra.mxu1 %v2161_v20  ;;  %v3305_v20 = vld [vmem:[%s4122_s15 + $0x58] sm:$0xff]  }
0x11ea   : > { %v2101_v23 = vmul.f32 %v3354_v22, %v3346_v62  ;;  %3161 = vmatprep.subr.bf16.mxu1 %v3430_v44  ;;  %v3307_v22 = vld [vmem:[%s4122_s15 + $0x68] sm:$0xff]  }
0x11ec   : > { %3152 = vmatmul.mubr.msk.bf16.vlgmr.msra.gmra.mrb[44].mxu1 %vm1235_vm8, %v2104_v24  ;;  %v2105_v26 = vpack.c.bf16 %v2101_v23, %v2101_v23  ;;  %v3308_v23 = vld [vmem:[%s4122_s15 + $0x70] sm:$0xff]   ;;  %v3309_v24 = vld [vmem:[%s4122_s15 + $0x78] sm:$0xff]  }
0x11ed   : > { %v3356_v27 = vpop.eup %3355  ;;  %3162 = vmatpush3.bf16.msra.mxu1 %v2257_v25  ;;  %3163 = vmatprep.mubr.msk.bf16.mxu1 %vm3431_vm2, %v3430_v44  ;;  %v2906_v25 = vld [vmem:[%s4121_s14 + $0x1] ss:$0 sm:$0xff] }
0x11ee   : > { %v2102_v28 = vmul.f32 %v3356_v27, %v3348_v5  ;;  %3158 = vmatmul.mubr.msk.bf16.vlgmr.msra.gmra.mrb[32].mxu0 %vm1235_vm8, %v2105_v26  ;;  %3175 = vmatprep.subr.bf16.mxu1 %v3430_v44  ;;  %v3301_v5 = vld [vmem:[%s4120_s13 + $0x18] sm:$0xff]  }
0x11ef   : > { %3171 = vmatprep.mubr.msk.bf16.mxu0 %vm3431_vm2, %v3430_v44  ;;  %3168 = vmatpush3.bf16.msra.mxu0 %v3298_v33 }
0x11f0   : > { %v2106_v29 = vpack.c.bf16 %v2102_v28, %v2102_v28  ;;  %3169 = vmatprep.subr.bf16.mxu0 %v3430_v44 }
0x11f3   : > { %3170 = vmatpush3.bf16.msra.mxu0 %v3299_v34 }
0x11f4   : > { %3164 = vmatmul.mubr.msk.bf16.vlgmr.msra.gmra.mrb[48].mxu1 %vm1235_vm8, %v2106_v29  ;;  %3183 = vmatprep.subr.bf16.mxu0 %v3430_v44 }
0x11f5   : > { %3179 = vmatprep.mubr.msk.bf16.mxu1 %vm3431_vm2, %v3430_v44 }
0x124c   : > { %v2149_v7 = vpop.f32.mrb[28].mxu0 }
0x124d   : > { %v3147_v30 = vpop.f32.mrb[29].mxu0 }
0x124e   : > { %v2152_v31 = vpop.f32.mrb[30].mxu0 }
0x124f   : > { %v3148_v32 = vpop.f32.mrb[31].mxu0 }
0x12bf   : > { %v2197_v35 = vpop.f32.mrb[44].mxu1 }
0x12c0   : > { %2300 = vrot.lane.b32.xlu1 %v2197_v35, %s4174_s30  ;;  %v3153_v37 = vpop.f32.mrb[45].mxu1 }
0x12c1   : > { %v2200_v38 = vpop.f32.mrb[46].mxu1  ;;  %v2245_v39 = vpop.f32.mrb[32].mxu0 }
0x12c2   : > { %v3159_v40 = vpop.f32.mrb[33].mxu0  ;;  %2304 = vrot.lane.b32.xlu0 %v2245_v39, %s4175_s23  ;;  %v3154_v42 = vpop.f32.mrb[47].mxu1  ;;  %v2936_v39 = vld [vmem:[%s4123_s16 + $0x1] ss:$0 sm:$0xff]  ;;  %s4177_s23 = sld [smem:[#allocation19_spill]] }
0x12c3   : > { %v2248_v43 = vpop.f32.mrb[34].mxu0 }
0x12c4   : > { %v3160_v45 = vpop.f32.mrb[35].mxu0 }
0x12c7   : > { %v2293_v46 = vpop.f32.mrb[48].mxu1 }
0x12c8   : > { %2308 = vrot.lane.b32.xlu1 %v2293_v46, %s4176_s2  ;;  %v3165_v47 = vpop.f32.mrb[49].mxu1  ;;  %s4065_s2 = scalar_lea.hbm %s4177_s23, %s2942_s29 }
0x12c9   : > { %v2296_v48 = vpop.f32.mrb[50].mxu1 }
0x12ca   : > { %v3166_v49 = vpop.f32.mrb[51].mxu1 }
0x1332   : > { %v2301_v50 = vpop.permute.xlu1 %2300 }
0x1333   : > { %v2311_v51 = vsel %vm990_vm4, %v2149_v7, %v2301_v50 }
0x1334   : > { %v2305_v52 = vpop.permute.xlu0 %2304 }
0x1335   : > { %v2312_v53 = vsel %vm1443_vm9, %v2311_v51, %v2305_v52 }
0x133a   : > { %v2309_v54 = vpop.permute.xlu1 %2308 }
0x133b   : > { %v2313_v55 = vsel %vm1445_vm10, %v2312_v53, %v2309_v54  ;;  %v3310_v53 = vld [vmem:[%s4126_s19] sm:$0xff]   ;;  %v3311_v54 = vld [vmem:[%s4126_s19 + $0x8] sm:$0xff]  }
0x133c   : > { %v2319_v56 = vpack.c.bf16 %v2313_v55, %v2313_v55 }
0x133e   : > { %3172 = vmatmul.mubr.msk.bf16.vlgmr.msra.gmra.mrb[36].mxu0 %vm914_vm3, %v2319_v56 }
0x133f   : > { %3199 = vmatprep.mubr.msk.bf16.mxu0 %vm3431_vm2, %v3430_v44  ;;  %3184 = vmatpush3.bf16.msra.mxu0 %v3302_v8 }
0x1340   : > { %3185 = vmatprep.subr.bf16.mxu0 %v3430_v44 }
0x1343   : > { %3186 = vmatpush3.bf16.msra.mxu0 %v3303_v18 }
0x1344   : > { %3187 = vmatprep.subr.bf16.mxu0 %v3430_v44 }
0x1347   : > { %3188 = vmatpush3.bf16.msra.mxu0 %v3304_v19 }
0x1348   : > { %3189 = vmatprep.subr.bf16.mxu0 %v3430_v44 }
0x134b   : > { %3190 = vmatpush3.bf16.msra.mxu0 %v3305_v20 }
0x134c   : > { %3191 = vmatprep.subr.bf16.mxu0 %v3430_v44 }
0x134f   : > { %3192 = vmatpush3.bf16.msra.mxu0 %v3306_v21 }
0x1350   : > { %3193 = vmatprep.subr.bf16.mxu0 %v3430_v44 }
0x1353   : > { %3194 = vmatpush3.bf16.msra.mxu0 %v3307_v22 }
0x1354   : > { %3195 = vmatprep.subr.bf16.mxu0 %v3430_v44 }
0x1357   : > { %3196 = vmatpush3.bf16.msra.mxu0 %v3308_v23 }
0x1358   : > { %3197 = vmatprep.subr.bf16.mxu0 %v3430_v44 }
0x135b   : > { %3198 = vmatpush3.bf16.msra.mxu0 %v3309_v24 }
0x1411   : > { %v2369_v57 = vpop.f32.mrb[36].mxu0 }
0x1412   : > { %v2375_v59 = vadd.f32 %v2369_v57, %v3854_v41  ;;  %v3173_v60 = vpop.f32.mrb[37].mxu0  ;;  %v3300_v41 = vld [vmem:[%s4120_s13 + $0x10] sm:$0xff]  }
0x1413   : > { %v2372_v61 = vpop.f32.mrb[38].mxu0  ;;  %3176 = vmatpush3.bf16.msra.mxu1 %v3300_v41 }
0x1414   : > { %v3975_v63 = vadd.f32 %v2896_v58, %v2375_v59  ;;  %v3174_v0 = vpop.f32.mrb[39].mxu0  ;;  %3177 = vmatprep.subr.bf16.mxu1 %v3430_v44  ;;  %v2609_v59 = vld [vmem:[%s4124_s17] sm:$0x1] }
0x1415   : > { %v2610_v61 = vld [vmem:[%s4125_s18] sm:$0x1] }
0x1416   : > { %v2389_v1 = vsel %vm832_vm1, %v3975_v63, 0.0 }
0x1417   : > { %2390 = vadd.xlane.f32.xlu0 %v2389_v1  ;;  %3178 = vmatpush3.bf16.msra.mxu1 %v3301_v5  ;;  %v2690_v5 = vld [vmem:[%s4128_s21] sm:$0x1] }
0x1418   : > { %3203 = vmatprep.subr.bf16.mxu1 %v3430_v44 }
0x14a4   : > { %v2391_v2 = vpop.xlane.xlu0 %2390 }
0x14a5   : > { %v2392_v36 = vmul.f32 0.03125, %v2391_v2  ;;  %v3312_v2 = vld [vmem:[%s4127_s20] sm:$0xff]  }
0x14a7   : > { %v2393_v3 = vsub.f32 %v3975_v63, %v2392_v36 }
0x14a9   : > { %v2394_v62 = vmul.f32 %v2393_v3, %v2393_v3 }
0x14ab   : > { %v2395_v4 = vsel %vm832_vm1, %v2394_v62, 0.0 }
0x14ac   : > { %2396 = vadd.xlane.f32.xlu1 %v2395_v4 }
0x1539   : > { %v2397_v9 = vpop.xlane.xlu1 %2396 }
0x153a   : > { %v2398_v10 = vmul.f32 0.03125, %v2397_v9 }
0x153c   : > { %v2399_v6 = vadd.f32 1e-05, %v2398_v10 }
0x153e   : > { %3357 = vrsqrt.f32 %v2399_v6 }
0x1548   : > { %v3358_v12 = vpop.eup %3357 }
0x1549   : > { %v2401_v14 = vmul.f32 %v3358_v12, %v2393_v3 }
0x154b   : > { %v2408_v11 = vmul.f32 %v2899_v13, %v2401_v14 }
0x154d   : > { %v2415_v16 = vadd.f32 %v2900_v15, %v2408_v11 }
0x154f   : > { %v2421_v17 = vpack.c.bf16 %v2415_v16, %v2415_v16 }
0x1551   : > { %3180 = vmatmul.mubr.msk.bf16.vlgmr.msra.gmra.mrb[52].mxu1 %vm914_vm3, %v2421_v17 }
0x1552   : > { %3207 = vmatprep.mubr.msk.bf16.mxu1 %vm3431_vm2, %v3430_v44  ;;  %3204 = vmatpush3.bf16.msra.mxu1 %v3310_v53 }
0x1553   : > { %3205 = vmatprep.subr.bf16.mxu1 %v3430_v44 }
0x1556   : > { %3206 = vmatpush3.bf16.msra.mxu1 %v3311_v54 }
0x1557   : > { %3211 = vmatprep.subr.bf16.mxu1 %v3430_v44 }
0x1624   : > { %v2479_v26 = vpop.f32.mrb[52].mxu1 }
0x1625   : > { %v2480_v27 = vadd.f32 %v2906_v25, %v2479_v26  ;;  %v3181_v28 = vpop.f32.mrb[53].mxu1 }
0x1626   : > { %v2482_v29 = vpop.f32.mrb[54].mxu1 }
0x1627   : > { %v2910_v7 = vmul.f32 -1.702, %v2480_v27  ;;  %v3182_v30 = vpop.f32.mrb[55].mxu1 }
0x1629   : > { %v2487_v31 = vmul.f32 1.442695, %v2910_v7 }
0x162b   : > { %3359 = vpow2.f32 %v2487_v31 }
0x1635   : > { %v3360_v32 = vpop.eup %3359 }
0x1636   : > { %v2489_v33 = vadd.f32 1.0, %v3360_v32 }
0x1638   : > { %3361 = vrcp.f32 %v2489_v33 }
0x1642   : > { %v3362_v34 = vpop.eup %3361 }
0x1643   : > { %v2492_v35 = vmul.f32 %v3362_v34, %v2480_v27 }
0x1645   : > { %v2510_v37 = vpack.c.bf16 %v2492_v35, %v2492_v35 }
0x1647   : > { %3200 = vmatmul.mubr.bf16.vlgmr.msra.gmra.mrb[40].mxu0 %v2510_v37 }
0x171a   : > { %v2593_v38 = vpop.f32.mrb[40].mxu0 }
0x171b   : > { %v2599_v40 = vadd.f32 %v2593_v38, %v3975_v63  ;;  %v3201_v42 = vpop.f32.mrb[41].mxu0 }
0x171c   : > { %v2596_v43 = vpop.f32.mrb[42].mxu0 }
0x171d   : > { %v3202_v45 = vpop.f32.mrb[43].mxu0  ;;  %v2608_v46 = vadd.f32 %v2936_v39, %v2599_v40 }
0x171f   : > { %v2612_v47 = vsel %vm2611_vm11, %v2608_v46, 0.0 }
0x1720   : > { %2613 = vadd.xlane.f32.xlu0 %v2612_v47 }
0x17ad   : > { %v2614_v48 = vpop.xlane.xlu0 %2613 }
0x17ae   : > { %v2615_v49 = vmul.f32 0.03125, %v2614_v48 }
0x17b0   : > { %v2616_v50 = vsub.f32 %v2608_v46, %v2615_v49 }
0x17b2   : > { %v2617_v51 = vmul.f32 %v2616_v50, %v2616_v50 }
0x17b4   : > { %v2618_v52 = vsel %vm2611_vm11, %v2617_v51, 0.0 }
0x17b5   : > { %2619 = vadd.xlane.f32.xlu0 %v2618_v52 }
0x1842   : > { %v2620_v55 = vpop.xlane.xlu0 %2619 }
0x1843   : > { %v2621_v56 = vmul.f32 0.03125, %v2620_v55 }
0x1845   : > { %v2622_v57 = vadd.f32 1e-05, %v2621_v56 }
0x1847   : > { %3363 = vrsqrt.f32 %v2622_v57 }
0x1851   : > { %v3364_v58 = vpop.eup %3363 }
0x1852   : > { %v2624_v60 = vmul.f32 %v3364_v58, %v2616_v50 }
0x1854   : > { %v2625_v63 = vmul.f32 %v2624_v60, %v2609_v59 }
0x1856   : > { %v2626_v0 = vadd.f32 %v2625_v63, %v2610_v61 }
0x1858   : > { %v2631_v1 = vpack.c.bf16 %v2626_v0, %v2626_v0 }
0x185a   : > { %3208 = vmatmul.mubr.msk.bf16.vlgmr.msra.gmra.mrb[56].mxu1 %vm914_vm3, %v2631_v1 }
0x185b   : > { %3213 = vmatprep.mubr.msk.bf16.mxu1 %vm3431_vm2, %v3430_v44  ;;  %3212 = vmatpush3.bf16.msra.mxu1 %v3312_v2 }
0x192d   : > { %v2681_v36 = vpop.f32.mrb[56].mxu1 }
0x192e   : > { %v2689_v3 = vpack.c.bf16 %v2681_v36, %v2681_v36  ;;  %v3209_v62 = vpop.f32.mrb[57].mxu1 }
0x192f   : > { %v2684_v4 = vpop.f32.mrb[58].mxu1 }
0x1930   : > { %v3210_v41 = vpop.f32.mrb[59].mxu1  ;;  %3214 = vmatmul.mubr.msk.bf16.vlgmr.msra.gmra.mrb[60].mxu1 %vm1443_vm9, %v2689_v3 }
0x1a03   : > { %v2734_v44 = vpop.f32.mrb[60].mxu1 }
0x1a04   : > { %v2735_v9 = vadd.f32 %v2734_v44, %v2690_v5  ;;  %v3215_v10 = vpop.f32.mrb[61].mxu1 }
0x1a05   : > { %v2737_v6 = vpop.f32.mrb[62].mxu1 }
0x1a06   : > { %v3216_v12 = vpop.f32.mrb[63].mxu1  ;;  %2741 = vst.msk [vmem:[%s675_s24] sm:$0x1] %vm2740_vm12, %v2735_v9 }
0x1a07   : > { %3378 = shalt.err (!%p3375_p3)
}
0x1a08   : > { %s3379_s3 = scalar_lea.hbm %s4065_s2, 16  ;;  %s3383_s30 = scalar_lea.hbm %s4177_s23, 32 }
0x1a09   : > { %p3380_p4 = scmp.ne.s32.totalorder %s4065_s2, %s3379_s3  ;;  %p3384_p9 = scmp.lt.u32.totalorder %s4065_s2, %s4177_s23 }
0x1a0a   : > { %p3385_p10 = scmp.lt.u32.totalorder %s3383_s30, %s3379_s3  ;;  %p3387_p12 = scmp.lt.u32.totalorder %s3379_s3, %s4065_s2 }
0x1a0b   : > { %p3381_p7 = pnand %p3380_p4, %p3595_p5 }
0x1a0c   : > { %p3386_p11 = por %p3385_p10, %p3384_p9 }
0x1a0d   : > { %p3382_p8 = pneg %p3381_p7 }
0x1a0e   : > { %p3388_p13 = por %p3387_p12, %p3386_p11 }
0x1a10   : > { %p3389_p0 = pnand %p3388_p13, %p3382_p8 }
0x1a12   : > { %3392 = shalt.err (!%p3389_p0)
}
0x1a13   : > { %3217 = dma.vmem_to_hbm [thread:$0]  (%p3595_p5), %s4067_s5, 16, %s4065_s2, %s2743_s4  }
0x1a14 PF: > { %s4178_s22 = sld [smem:[#allocation7_spill]]  ;;  %s4179_s0 = sld [smem:[#allocation5_spill]] }
0x1a1a   : > { %p3223_p1 = scmp.ge.s32.totalorder %s4178_s22, 2  ;;  %s2767_s24 = sand.u32 1, %s4179_s0  }
0x1a1b   : > { %s2768_s1 = scalar_lea.sflag [#allocation3], %s2767_s24 }
0x1a1c   : > { %p3220_p2 = pnand %p3223_p1, %p3599_p6 }
0x1a1e   : > { %3410 = dma.done.wait (!%p3220_p2), %s2768_s1, 16  }
0x1a1f   : > { %3412 = vsyncadd (!%p3220_p2), %s2768_s1, 4294967280  ;;  %s4181_s30 = sld [smem:[#allocation8_spill]]  ;;  %s4182_s7 = sld [smem:[#allocation6_spill]] }
0x1a20   : > { %s4183_s29 = sld [smem:[#allocation9_spill]]  ;;  %s4184_s3 = smov %s3419_s28 }
0x1a25   : > { %p32_p3 = scmp.ge.s32.totalorder %s4181_s30, 4   ;;  %s4185_s28 = smov %s4182_s7 }
0x1a27   :  { %34 = sbr.rel (!%p32_p3) target bundleno = 13 (0xd), region = 155 }
0x1a2e   :  { %2772 = vsyncpa [#allocation3], 1 }
0x1a2f   :  { %2774 = vsyncpa [#allocation3 + $0x1], 1 }

</bundles_post_ra>
